<compile_context>
chip_gen: v6e
topology: v6e:2x2x1
jax: 0.10.0
libtpu: 0.0.40
codegen_flags: <defaults>
</compile_context>

<pallas_src>
import functools
import math

import jax
import jax.numpy as jnp
from jax.experimental import pallas as pl
from jax.experimental.pallas import tpu as pltpu


VMEM_LIMIT_BYTES = 48 * 1024 * 1024   # explicit, above default scoped limits


# ---------------------------------------------------------------------------
# In-kernel helpers
# ---------------------------------------------------------------------------

def _ln(x, g, b, eps):
    m = jnp.mean(x, axis=-1, keepdims=True)
    v = jnp.mean((x - m) ** 2, axis=-1, keepdims=True)
    return (x - m) * jax.lax.rsqrt(v + eps) * g + b


# ---------------------------------------------------------------------------
# Pallas kernels
# ---------------------------------------------------------------------------

def _patch_embed_kernel(patches_ref, pw_ref, pb_ref, cls_ref, pos_ref, o_ref):
    """Patch-embedding matmul + cls-token + pos-embed epilogue, one (vit, batch)."""
    P = patches_ref.shape[1]
    p = patches_ref[0].astype(jnp.bfloat16)                       # (P, pdim)
    tok = jnp.dot(p, pw_ref[0], preferred_element_type=jnp.float32)
    tok = tok + pb_ref[0] + pos_ref[0, pl.ds(1, P), :]            # (P, D)
    o_ref[0, 0, pl.ds(0, 1), :] = cls_ref[0] + pos_ref[0, pl.ds(0, 1), :]
    o_ref[0, 0, pl.ds(1, P), :] = tok


def _attn_kernel(x_ref, ln_g, ln_b, wqkv, bqkv, wo, bo, o_ref, *, num_heads, eps):
    """Pre-LN multi-head self-attention for one (vit, batch) block.

    Per-head unrolled 2-D matmuls: wqkv is laid out (3*H, D, hd), g = kind*H + head,
    and wo is (H, hd, D), so every weight access is leading-dim indexing only — no
    activation broadcast/replication, no lane slicing, no in-kernel transposes.
    """
    x = x_ref[0, 0]                                               # (S, D) f32
    S, D = x.shape
    H = num_heads
    hd = D // H
    scale = 1.0 / math.sqrt(hd)

    h = _ln(x, ln_g[0], ln_b[0], eps).astype(jnp.bfloat16)        # (S, D) bf16

    out = jnp.zeros((S, D), jnp.float32)
    for hi in range(H):
        q = jnp.dot(h, wqkv[0, hi], preferred_element_type=jnp.float32) \
            + bqkv[0, hi]                                         # (S, hd)
        k = jnp.dot(h, wqkv[0, H + hi], preferred_element_type=jnp.float32) \
            + bqkv[0, H + hi]
        v = jnp.dot(h, wqkv[0, 2 * H + hi], preferred_element_type=jnp.float32) \
            + bqkv[0, 2 * H + hi]

        # scores: contract the hd axis of q and k (trans_b matmul on the MXU).
        s = jax.lax.dot_general(
            q.astype(jnp.bfloat16), k.astype(jnp.bfloat16),
            (((1,), (1,)), ((), ())),
            preferred_element_type=jnp.float32) * scale           # (S, S)
        s = s - jnp.max(s, axis=-1, keepdims=True)
        e = jnp.exp(s)
        p = e * pl.reciprocal(jnp.sum(e, axis=-1, keepdims=True), approx=True)

        ctx = jnp.dot(p.astype(jnp.bfloat16), v.astype(jnp.bfloat16),
                      preferred_element_type=jnp.float32)         # (S, hd)
        out = out + jnp.dot(ctx.astype(jnp.bfloat16), wo[0, hi],
                            preferred_element_type=jnp.float32)   # (S, D)

    out = out + bo[0]
    o_ref[0, 0] = x + out


def _mlp_kernel(x_ref, ln_g, ln_b, w1, b1, w2, b2, lnf_g, lnf_b, o_ref,
                *, eps, final_ln):
    """Pre-LN MLP (GELU) for one (vit, batch) block; optionally fuses the final LN."""
    x = x_ref[0, 0]                                               # (S, D) f32
    h = _ln(x, ln_g[0], ln_b[0], eps).astype(jnp.bfloat16)
    m1 = jnp.dot(h, w1[0], preferred_element_type=jnp.float32) + b1[0]
    # TODO(synk): torchvision MLP uses exact (erf) GELU; tanh approximation used here.
    m1 = jax.nn.gelu(m1, approximate=True).astype(jnp.bfloat16)
    m2 = jnp.dot(m1, w2[0], preferred_element_type=jnp.float32) + b2[0]
    y = x + m2
    if final_ln:
        y = _ln(y, lnf_g[0], lnf_b[0], eps)
    o_ref[0, 0] = y


def _decoder_kernel(feat_ref, w1t_ref, b1_ref, w2_ref, b2_ref, o_ref):
    """Fused torch.cat(dim=1) + permute(2,0,1) + Linear + ReLU + Linear(->1).

    One grid step per batch element.  feat block: (3, 1, S, D) stacked tokens.
    w1t: (3, Hd, S) (pre-transposed, per-vit split of Linear(3S -> Hd)).
    Output block: (1, 1, D); the tiny (N, 1, D) -> (D, N, 1) permute is done by
    the caller.
    """
    V = feat_ref.shape[0]
    D = feat_ref.shape[3]
    Hd = w1t_ref.shape[1]
    acc = jnp.zeros((Hd, D), jnp.float32)
    for i in range(V):
        fi = feat_ref[i, 0].astype(jnp.bfloat16)                  # (S, D)
        acc = acc + jnp.dot(w1t_ref[i], fi,
                            preferred_element_type=jnp.float32)   # (Hd, D)
    t = jnp.maximum(acc + b1_ref[...], 0.0)                       # (Hd, D)
    # Final Linear(Hd -> 1) as a row reduction (avoids an MXU N=1 matmul).
    row = jnp.sum(t * w2_ref[...], axis=0, keepdims=True) + b2_ref[...]   # (1, D)
    o_ref[0] = row


# ---------------------------------------------------------------------------
# pallas_call wrappers
# ---------------------------------------------------------------------------

def _grid_params():
    return pltpu.CompilerParams(
        dimension_semantics=("parallel", "parallel"),
        vmem_limit_bytes=VMEM_LIMIT_BYTES)


def _vit_weight_spec(w):
    """Per-vit weight block: index only by the vit grid axis (re-fetched 3x total)."""
    nd = w.ndim
    return pl.BlockSpec((1,) + w.shape[1:],
                        lambda v, n, _nd=nd: (v,) + (0,) * (_nd - 1))


def patch_embed(patches, params):
    N, P, pdim = patches.shape
    V, S, D = params["pos_embed"].shape
    weights = [params["patch_w"], params["patch_b"],
               params["cls_token"], params["pos_embed"]]
    return pl.pallas_call(
        _patch_embed_kernel,
        out_shape=jax.ShapeDtypeStruct((V, N, S, D), jnp.float32),
        grid=(V, N),
        in_specs=[pl.BlockSpec((1, P, pdim), lambda v, n: (n, 0, 0))] +
                 [_vit_weight_spec(w) for w in weights],
        out_specs=pl.BlockSpec((1, 1, S, D), lambda v, n: (v, n, 0, 0)),
        compiler_params=_grid_params(),
    )(patches, *weights)


def attention_block(tokens, lp, *, num_heads):
    V, N, S, D = tokens.shape
    weights = [lp["ln1_g"], lp["ln1_b"], lp["wqkv"], lp["bqkv"], lp["wo"], lp["bo"]]
    return pl.pallas_call(
        functools.partial(_attn_kernel, num_heads=num_heads, eps=1e-6),
        out_shape=jax.ShapeDtypeStruct((V, N, S, D), jnp.float32),
        grid=(V, N),
        in_specs=[pl.BlockSpec((1, 1, S, D), lambda v, n: (v, n, 0, 0))] +
                 [_vit_weight_spec(w) for w in weights],
        out_specs=pl.BlockSpec((1, 1, S, D), lambda v, n: (v, n, 0, 0)),
        compiler_params=_grid_params(),
    )(tokens, *weights)


def mlp_block(tokens, lp, lnf_g, lnf_b, *, final_ln):
    V, N, S, D = tokens.shape
    weights = [lp["ln2_g"], lp["ln2_b"], lp["w1"], lp["b1"], lp["w2"], lp["b2"],
               lnf_g, lnf_b]
    return pl.pallas_call(
        functools.partial(_mlp_kernel, eps=1e-6, final_ln=final_ln),
        out_shape=jax.ShapeDtypeStruct((V, N, S, D), jnp.float32),
        grid=(V, N),
        in_specs=[pl.BlockSpec((1, 1, S, D), lambda v, n: (v, n, 0, 0))] +
                 [_vit_weight_spec(w) for w in weights],
        out_specs=pl.BlockSpec((1, 1, S, D), lambda v, n: (v, n, 0, 0)),
        compiler_params=_grid_params(),
    )(tokens, *weights)


def decode(tokens, params):
    V, N, S, D = tokens.shape
    w1t, b1, w2, b2 = (params["dec_w1t"], params["dec_b1"],
                       params["dec_w2"], params["dec_b2"])
    return pl.pallas_call(
        _decoder_kernel,
        out_shape=jax.ShapeDtypeStruct((N, 1, D), jnp.float32),
        grid=(N,),
        in_specs=[pl.BlockSpec((V, 1, S, D), lambda n: (0, n, 0, 0)),
                  pl.BlockSpec(w1t.shape, lambda n: (0, 0, 0)),
                  pl.BlockSpec(b1.shape, lambda n: (0, 0)),
                  pl.BlockSpec(w2.shape, lambda n: (0, 0)),
                  pl.BlockSpec(b2.shape, lambda n: (0, 0))],
        out_specs=pl.BlockSpec((1, 1, D), lambda n: (n, 0, 0)),
        compiler_params=pltpu.CompilerParams(
            dimension_semantics=("parallel",),
            vmem_limit_bytes=VMEM_LIMIT_BYTES),
    )(tokens, w1t, b1, w2, b2)


# ---------------------------------------------------------------------------
# EarlyConcat forward (glue in plain JAX, compute in Pallas kernels)
# ---------------------------------------------------------------------------

def early_concat_forward(x_nchw, params, *, patch_size, num_heads):
    N, C, Himg, Wimg = x_nchw.shape
    ps = patch_size
    gh, gw = Himg // ps, Wimg // ps
    # Patch extraction is layout glue only; all compute runs in Pallas kernels.
    patches = x_nchw.reshape(N, C, gh, ps, gw, ps)
    patches = patches.transpose(0, 2, 4, 1, 3, 5).reshape(N, gh * gw, C * ps * ps)

    tokens = patch_embed(patches, params)                  # (3, N, S, D)
    n_layers = len(params["layers"])
    for li, lp in enumerate(params["layers"]):
        tokens = attention_block(tokens, lp, num_heads=num_heads)
        tokens = mlp_block(tokens, lp, params["lnf_g"], params["lnf_b"],
                           final_ln=(li == n_layers - 1))

    out_n1d = decode(tokens, params)                       # (N, 1, D)
    # torch.cat(dim=1) + permute(2,0,1) + Decoder are fused in the decoder kernel;
    # only this tiny (N, 1, D) -> (D, N, 1) output permute remains.
    return jnp.transpose(out_n1d, (2, 0, 1))


# ---------------------------------------------------------------------------
# Deterministic parameter init (3 ViTs stacked along a leading axis)
# ---------------------------------------------------------------------------

def init_early_concat_params(key, *, image_size, patch_size, num_layers,
                             num_heads, hidden_dim, mlp_dim, channels):
    V = 3
    P = (image_size // patch_size) ** 2
    S = P + 1
    hd = hidden_dim // num_heads
    pdim = channels * patch_size * patch_size

    keys = jax.random.split(key, 8 + 4 * num_layers)
    kit = iter(keys)

    def nrm(shape, dtype=jnp.float32, scale=0.02):
        return (scale * jax.random.normal(next(kit), shape, jnp.float32)).astype(dtype)

    params = {
        "patch_w": nrm((V, pdim, hidden_dim), jnp.bfloat16),
        "patch_b": jnp.zeros((V, 1, hidden_dim), jnp.float32),
        "cls_token": nrm((V, 1, hidden_dim)),
        "pos_embed": nrm((V, S, hidden_dim)),
        "lnf_g": jnp.ones((V, 1, hidden_dim), jnp.float32),
        "lnf_b": jnp.zeros((V, 1, hidden_dim), jnp.float32),
        "layers": [],
        # Decoder(hidden_dim, 3*S, 1): Linear(3S -> hidden) + ReLU + Linear(hidden -> 1)
        # dec_w1t is the first Linear pre-transposed and split per vit: (V, hidden, S).
        "dec_w1t": nrm((V, hidden_dim, S), jnp.bfloat16),
        "dec_b1": jnp.zeros((hidden_dim, 1), jnp.float32),
        "dec_w2": nrm((hidden_dim, 1)),
        "dec_b2": jnp.zeros((1, 1), jnp.float32),
    }
    for _ in range(num_layers):
        params["layers"].append({
            "ln1_g": jnp.ones((V, 1, hidden_dim), jnp.float32),
            "ln1_b": jnp.zeros((V, 1, hidden_dim), jnp.float32),
            # QKV projection laid out per (kind, head): g = kind*H + head.
            "wqkv": nrm((V, 3 * num_heads, hidden_dim, hd), jnp.bfloat16),
            "bqkv": jnp.zeros((V, 3 * num_heads, 1, hd), jnp.float32),
            # Output projection split per head: (head, hd, D).
            "wo": nrm((V, num_heads, hd, hidden_dim), jnp.bfloat16),
            "bo": jnp.zeros((V, 1, hidden_dim), jnp.float32),
            "ln2_g": jnp.ones((V, 1, hidden_dim), jnp.float32),
            "ln2_b": jnp.zeros((V, 1, hidden_dim), jnp.float32),
            "w1": nrm((V, hidden_dim, mlp_dim), jnp.bfloat16),
            "b1": jnp.zeros((V, 1, mlp_dim), jnp.float32),
            "w2": nrm((V, mlp_dim, hidden_dim), jnp.bfloat16),
            "b2": jnp.zeros((V, 1, hidden_dim), jnp.float32),
        })
    return params


# ---------------------------------------------------------------------------
# Demo
# ---------------------------------------------------------------------------

if __name__ == "__main__":
    # Small, ViT-consistent shapes.
    batch = 2
    channels = 3
    image_size = 16
    patch_size = 4
    num_layers = 2
    num_heads = 2
    hidden_dim = 32
    mlp_dim = 64

    key = jax.random.PRNGKey(0)
    kx, kp = jax.random.split(key)
    x = jax.random.normal(kx, (batch, channels, image_size, image_size),
                          dtype=jnp.float32)
    params = init_early_concat_params(
        kp, image_size=image_size, patch_size=patch_size, num_layers=num_layers,
        num_heads=num_heads, hidden_dim=hidden_dim, mlp_dim=mlp_dim,
        channels=channels)

    fwd = jax.jit(functools.partial(early_concat_forward,
                                    patch_size=patch_size, num_heads=num_heads))
    out = fwd(x, params)
    out = jax.block_until_ready(out)
    assert out.shape == (hidden_dim, batch, 1)
    assert bool(jnp.all(jnp.isfinite(out)))
    print("KERNEL_OK")
</pallas_src>

<mosaic_0001>
module attributes {stable_mosaic.version = 11 : i64} {
  func.func @_patch_embed_kernel(%arg0: i32, %arg1: i32, %arg2: memref<1x16x48xf32, #tpu.memory_space<vmem>>, %arg3: memref<1x48x32xbf16, #tpu.memory_space<vmem>>, %arg4: memref<1x1x32xf32, #tpu.memory_space<vmem>>, %arg5: memref<1x1x32xf32, #tpu.memory_space<vmem>>, %arg6: memref<1x17x32xf32, #tpu.memory_space<vmem>>, %arg7: memref<1x1x17x32xf32, #tpu.memory_space<vmem>>) attributes {dimension_semantics = [#tpu.dimension_semantics<parallel>, #tpu.dimension_semantics<parallel>], iteration_bounds = array<i64: 3, 2>, scalar_prefetch = 0 : i64, scratch_operands = 0 : i64, tpu.core_type = #tpu.core_type<tc>, window_params = [{transform_indices = @transform_0, window_bounds = array<i64: 1, 16, 48>}, {transform_indices = @transform_1, window_bounds = array<i64: 1, 48, 32>}, {transform_indices = @transform_2, window_bounds = array<i64: 1, 1, 32>}, {transform_indices = @transform_3, window_bounds = array<i64: 1, 1, 32>}, {transform_indices = @transform_4, window_bounds = array<i64: 1, 17, 32>}, {transform_indices = @transform_5, window_bounds = array<i64: 1, 1, 17, 32>}]} {
    %c0 = arith.constant 0 : index
    %c0_0 = arith.constant 0 : index
    %c0_1 = arith.constant 0 : index
    %0 = vector.load %arg2[%c0, %c0_0, %c0_1] : memref<1x16x48xf32, #tpu.memory_space<vmem>>, vector<1x16x48xf32>
    %1 = vector.shape_cast %0 : vector<1x16x48xf32> to vector<16x48xf32>
    %2 = arith.truncf %1 : vector<16x48xf32> to vector<16x48xbf16>
    %c0_2 = arith.constant 0 : index
    %c0_3 = arith.constant 0 : index
    %c0_4 = arith.constant 0 : index
    %3 = vector.load %arg3[%c0_2, %c0_3, %c0_4] : memref<1x48x32xbf16, #tpu.memory_space<vmem>>, vector<1x48x32xbf16>
    %4 = vector.shape_cast %3 : vector<1x48x32xbf16> to vector<48x32xbf16>
    %cst = arith.constant dense<0.000000e+00> : vector<16x32xf32>
    %5 = tpu.matmul %2, %4, %cst {dimension_numbers = #tpu.dot_dimension_numbers<[1], [0], [0], [1], [0, 0, 1, 1], [], []>} : vector<16x48xbf16>, vector<48x32xbf16>, vector<16x32xf32> -> vector<16x32xf32>
    %c0_5 = arith.constant 0 : index
    %c0_6 = arith.constant 0 : index
    %c0_7 = arith.constant 0 : index
    %6 = vector.load %arg4[%c0_5, %c0_6, %c0_7] : memref<1x1x32xf32, #tpu.memory_space<vmem>>, vector<1x1x32xf32>
    %7 = vector.shape_cast %6 : vector<1x1x32xf32> to vector<1x32xf32>
    %8 = vector.broadcast %7 : vector<1x32xf32> to vector<16x32xf32>
    %9 = arith.addf %5, %8 : vector<16x32xf32>
    %c0_8 = arith.constant 0 : index
    %c1 = arith.constant 1 : index
    %c0_9 = arith.constant 0 : index
    %10 = vector.load %arg6[%c0_8, %c1, %c0_9] : memref<1x17x32xf32, #tpu.memory_space<vmem>>, vector<1x16x32xf32>
    %11 = vector.shape_cast %10 : vector<1x16x32xf32> to vector<16x32xf32>
    %12 = arith.addf %9, %11 : vector<16x32xf32>
    %c0_10 = arith.constant 0 : index
    %c0_11 = arith.constant 0 : index
    %c0_12 = arith.constant 0 : index
    %13 = vector.load %arg5[%c0_10, %c0_11, %c0_12] : memref<1x1x32xf32, #tpu.memory_space<vmem>>, vector<1x1x32xf32>
    %14 = vector.shape_cast %13 : vector<1x1x32xf32> to vector<1x32xf32>
    %c0_13 = arith.constant 0 : index
    %c0_14 = arith.constant 0 : index
    %c0_15 = arith.constant 0 : index
    %15 = vector.load %arg6[%c0_13, %c0_14, %c0_15] : memref<1x17x32xf32, #tpu.memory_space<vmem>>, vector<1x1x32xf32>
    %16 = vector.shape_cast %15 : vector<1x1x32xf32> to vector<1x32xf32>
    %17 = arith.addf %14, %16 : vector<1x32xf32>
    %c0_16 = arith.constant 0 : index
    %c0_17 = arith.constant 0 : index
    %c0_18 = arith.constant 0 : index
    %c0_19 = arith.constant 0 : index
    %18 = vector.load %arg7[%c0_16, %c0_17, %c0_18, %c0_19] : memref<1x1x17x32xf32, #tpu.memory_space<vmem>>, vector<1x1x1x32xf32>
    %19 = vector.shape_cast %18 : vector<1x1x1x32xf32> to vector<1x32xf32>
    %20 = vector.shape_cast %17 : vector<1x32xf32> to vector<1x1x1x32xf32>
    tpu.vector_store %arg7[%c0_16, %c0_17, %c0_18, %c0_19], %20 {strides = array<i32>} : memref<1x1x17x32xf32, #tpu.memory_space<vmem>>, vector<1x1x1x32xf32>,
    %c0_20 = arith.constant 0 : index
    %c0_21 = arith.constant 0 : index
    %c1_22 = arith.constant 1 : index
    %c0_23 = arith.constant 0 : index
    %21 = vector.load %arg7[%c0_20, %c0_21, %c1_22, %c0_23] : memref<1x1x17x32xf32, #tpu.memory_space<vmem>>, vector<1x1x16x32xf32>
    %22 = vector.shape_cast %21 : vector<1x1x16x32xf32> to vector<16x32xf32>
    %23 = vector.shape_cast %12 : vector<16x32xf32> to vector<1x1x16x32xf32>
    tpu.vector_store %arg7[%c0_20, %c0_21, %c1_22, %c0_23], %23 {strides = array<i32>} : memref<1x1x17x32xf32, #tpu.memory_space<vmem>>, vector<1x1x16x32xf32>,
    return
  }
  func.func @transform_0(%arg0: i32, %arg1: i32) -> (i32, i32, i32) {
    %c0_i32 = arith.constant 0 : i32
    %c0_i32_0 = arith.constant 0 : i32
    %c0_i32_1 = arith.constant 0 : i32
    return %arg1, %c0_i32, %c0_i32_0 : i32, i32, i32
  }
  func.func @transform_1(%arg0: i32, %arg1: i32) -> (i32, i32, i32) {
    %c0_i32 = arith.constant 0 : i32
    %c0_i32_0 = arith.constant 0 : i32
    %c0_i32_1 = arith.constant 0 : i32
    return %arg0, %c0_i32, %c0_i32_0 : i32, i32, i32
  }
  func.func @transform_2(%arg0: i32, %arg1: i32) -> (i32, i32, i32) {
    %c0_i32 = arith.constant 0 : i32
    %c0_i32_0 = arith.constant 0 : i32
    %c0_i32_1 = arith.constant 0 : i32
    return %arg0, %c0_i32, %c0_i32_0 : i32, i32, i32
  }
  func.func @transform_3(%arg0: i32, %arg1: i32) -> (i32, i32, i32) {
    %c0_i32 = arith.constant 0 : i32
    %c0_i32_0 = arith.constant 0 : i32
    %c0_i32_1 = arith.constant 0 : i32
    return %arg0, %c0_i32, %c0_i32_0 : i32, i32, i32
  }
  func.func @transform_4(%arg0: i32, %arg1: i32) -> (i32, i32, i32) {
    %c0_i32 = arith.constant 0 : i32
    %c0_i32_0 = arith.constant 0 : i32
    %c0_i32_1 = arith.constant 0 : i32
    return %arg0, %c0_i32, %c0_i32_0 : i32, i32, i32
  }
  func.func @transform_5(%arg0: i32, %arg1: i32) -> (i32, i32, i32, i32) {
    %c0_i32 = arith.constant 0 : i32
    %c0_i32_0 = arith.constant 0 : i32
    %c0_i32_1 = arith.constant 0 : i32
    return %arg0, %arg1, %c0_i32, %c0_i32_0 : i32, i32, i32, i32
  }
}

module attributes {stable_mosaic.version = 11 : i64} {
  func.func @_attn_kernel(%arg0: i32, %arg1: i32, %arg2: memref<1x1x17x32xf32, #tpu.memory_space<vmem>>, %arg3: memref<1x1x32xf32, #tpu.memory_space<vmem>>, %arg4: memref<1x1x32xf32, #tpu.memory_space<vmem>>, %arg5: memref<1x6x32x16xbf16, #tpu.memory_space<vmem>>, %arg6: memref<1x6x1x16xf32, #tpu.memory_space<vmem>>, %arg7: memref<1x2x16x32xbf16, #tpu.memory_space<vmem>>, %arg8: memref<1x1x32xf32, #tpu.memory_space<vmem>>, %arg9: memref<1x1x17x32xf32, #tpu.memory_space<vmem>>) attributes {dimension_semantics = [#tpu.dimension_semantics<parallel>, #tpu.dimension_semantics<parallel>], iteration_bounds = array<i64: 3, 2>, scalar_prefetch = 0 : i64, scratch_operands = 0 : i64, tpu.core_type = #tpu.core_type<tc>, window_params = [{transform_indices = @transform_0, window_bounds = array<i64: 1, 1, 17, 32>}, {transform_indices = @transform_1, window_bounds = array<i64: 1, 1, 32>}, {transform_indices = @transform_2, window_bounds = array<i64: 1, 1, 32>}, {transform_indices = @transform_3, window_bounds = array<i64: 1, 6, 32, 16>}, {transform_indices = @transform_4, window_bounds = array<i64: 1, 6, 1, 16>}, {transform_indices = @transform_5, window_bounds = array<i64: 1, 2, 16, 32>}, {transform_indices = @transform_6, window_bounds = array<i64: 1, 1, 32>}, {transform_indices = @transform_7, window_bounds = array<i64: 1, 1, 17, 32>}]} {
    %c0 = arith.constant 0 : index
    %c0_0 = arith.constant 0 : index
    %c0_1 = arith.constant 0 : index
    %c0_2 = arith.constant 0 : index
    %0 = vector.load %arg2[%c0, %c0_0, %c0_1, %c0_2] : memref<1x1x17x32xf32, #tpu.memory_space<vmem>>, vector<1x1x17x32xf32>
    %1 = vector.shape_cast %0 : vector<1x1x17x32xf32> to vector<17x32xf32>
    %c0_3 = arith.constant 0 : index
    %c0_4 = arith.constant 0 : index
    %c0_5 = arith.constant 0 : index
    %2 = vector.load %arg3[%c0_3, %c0_4, %c0_5] : memref<1x1x32xf32, #tpu.memory_space<vmem>>, vector<1x1x32xf32>
    %3 = vector.shape_cast %2 : vector<1x1x32xf32> to vector<1x32xf32>
    %c0_6 = arith.constant 0 : index
    %c0_7 = arith.constant 0 : index
    %c0_8 = arith.constant 0 : index
    %4 = vector.load %arg4[%c0_6, %c0_7, %c0_8] : memref<1x1x32xf32, #tpu.memory_space<vmem>>, vector<1x1x32xf32>
    %5 = vector.shape_cast %4 : vector<1x1x32xf32> to vector<1x32xf32>
    %cst = arith.constant dense<0.000000e+00> : vector<17xf32>
    %6 = vector.multi_reduction <add>, %1, %cst [1] : vector<17x32xf32> to vector<17xf32>
    %7 = vector.shape_cast %6 : vector<17xf32> to vector<17x1xf32>
    %cst_9 = arith.constant 3.200000e+01 : f32
    %8 = vector.broadcast %cst_9 : f32 to vector<17x1xf32>
    %9 = arith.divf %7, %8 : vector<17x1xf32>
    %10 = vector.broadcast %9 : vector<17x1xf32> to vector<17x32xf32>
    %11 = arith.subf %1, %10 : vector<17x32xf32>
    %12 = arith.mulf %11, %11 : vector<17x32xf32>
    %cst_10 = arith.constant dense<0.000000e+00> : vector<17xf32>
    %13 = vector.multi_reduction <add>, %12, %cst_10 [1] : vector<17x32xf32> to vector<17xf32>
    %14 = vector.shape_cast %13 : vector<17xf32> to vector<17x1xf32>
    %cst_11 = arith.constant 3.200000e+01 : f32
    %15 = vector.broadcast %cst_11 : f32 to vector<17x1xf32>
    %16 = arith.divf %14, %15 : vector<17x1xf32>
    %17 = vector.broadcast %9 : vector<17x1xf32> to vector<17x32xf32>
    %18 = arith.subf %1, %17 : vector<17x32xf32>
    %cst_12 = arith.constant 9.99999997E-7 : f32
    %19 = vector.broadcast %cst_12 : f32 to vector<17x1xf32>
    %20 = arith.addf %16, %19 : vector<17x1xf32>
    %21 = math.rsqrt %20 : vector<17x1xf32>
    %22 = vector.broadcast %21 : vector<17x1xf32> to vector<17x32xf32>
    %23 = arith.mulf %18, %22 : vector<17x32xf32>
    %24 = vector.broadcast %3 : vector<1x32xf32> to vector<17x32xf32>
    %25 = arith.mulf %23, %24 : vector<17x32xf32>
    %26 = vector.broadcast %5 : vector<1x32xf32> to vector<17x32xf32>
    %27 = arith.addf %25, %26 : vector<17x32xf32>
    %28 = arith.truncf %27 : vector<17x32xf32> to vector<17x32xbf16>
    %cst_13 = arith.constant 0.000000e+00 : f32
    %29 = vector.broadcast %cst_13 : f32 to vector<17x32xf32>
    %c0_14 = arith.constant 0 : index
    %c0_15 = arith.constant 0 : index
    %c0_16 = arith.constant 0 : index
    %c0_17 = arith.constant 0 : index
    %30 = vector.load %arg5[%c0_14, %c0_15, %c0_16, %c0_17] : memref<1x6x32x16xbf16, #tpu.memory_space<vmem>>, vector<1x1x32x16xbf16>
    %31 = vector.shape_cast %30 : vector<1x1x32x16xbf16> to vector<32x16xbf16>
    %cst_18 = arith.constant dense<0.000000e+00> : vector<17x16xf32>
    %32 = tpu.matmul %28, %31, %cst_18 {dimension_numbers = #tpu.dot_dimension_numbers<[1], [0], [0], [1], [0, 0, 1, 1], [], []>} : vector<17x32xbf16>, vector<32x16xbf16>, vector<17x16xf32> -> vector<17x16xf32>
    %c0_19 = arith.constant 0 : index
    %c0_20 = arith.constant 0 : index
    %c0_21 = arith.constant 0 : index
    %c0_22 = arith.constant 0 : index
    %33 = vector.load %arg6[%c0_19, %c0_20, %c0_21, %c0_22] : memref<1x6x1x16xf32, #tpu.memory_space<vmem>>, vector<1x1x1x16xf32>
    %34 = vector.shape_cast %33 : vector<1x1x1x16xf32> to vector<1x16xf32>
    %35 = vector.broadcast %34 : vector<1x16xf32> to vector<17x16xf32>
    %36 = arith.addf %32, %35 : vector<17x16xf32>
    %c0_23 = arith.constant 0 : index
    %c2 = arith.constant 2 : index
    %c0_24 = arith.constant 0 : index
    %c0_25 = arith.constant 0 : index
    %37 = vector.load %arg5[%c0_23, %c2, %c0_24, %c0_25] : memref<1x6x32x16xbf16, #tpu.memory_space<vmem>>, vector<1x1x32x16xbf16>
    %38 = vector.shape_cast %37 : vector<1x1x32x16xbf16> to vector<32x16xbf16>
    %cst_26 = arith.constant dense<0.000000e+00> : vector<17x16xf32>
    %39 = tpu.matmul %28, %38, %cst_26 {dimension_numbers = #tpu.dot_dimension_numbers<[1], [0], [0], [1], [0, 0, 1, 1], [], []>} : vector<17x32xbf16>, vector<32x16xbf16>, vector<17x16xf32> -> vector<17x16xf32>
    %c0_27 = arith.constant 0 : index
    %c2_28 = arith.constant 2 : index
    %c0_29 = arith.constant 0 : index
    %c0_30 = arith.constant 0 : index
    %40 = vector.load %arg6[%c0_27, %c2_28, %c0_29, %c0_30] : memref<1x6x1x16xf32, #tpu.memory_space<vmem>>, vector<1x1x1x16xf32>
    %41 = vector.shape_cast %40 : vector<1x1x1x16xf32> to vector<1x16xf32>
    %42 = vector.broadcast %41 : vector<1x16xf32> to vector<17x16xf32>
    %43 = arith.addf %39, %42 : vector<17x16xf32>
    %c0_31 = arith.constant 0 : index
    %c4 = arith.constant 4 : index
    %c0_32 = arith.constant 0 : index
    %c0_33 = arith.constant 0 : index
    %44 = vector.load %arg5[%c0_31, %c4, %c0_32, %c0_33] : memref<1x6x32x16xbf16, #tpu.memory_space<vmem>>, vector<1x1x32x16xbf16>
    %45 = vector.shape_cast %44 : vector<1x1x32x16xbf16> to vector<32x16xbf16>
    %cst_34 = arith.constant dense<0.000000e+00> : vector<17x16xf32>
    %46 = tpu.matmul %28, %45, %cst_34 {dimension_numbers = #tpu.dot_dimension_numbers<[1], [0], [0], [1], [0, 0, 1, 1], [], []>} : vector<17x32xbf16>, vector<32x16xbf16>, vector<17x16xf32> -> vector<17x16xf32>
    %c0_35 = arith.constant 0 : index
    %c4_36 = arith.constant 4 : index
    %c0_37 = arith.constant 0 : index
    %c0_38 = arith.constant 0 : index
    %47 = vector.load %arg6[%c0_35, %c4_36, %c0_37, %c0_38] : memref<1x6x1x16xf32, #tpu.memory_space<vmem>>, vector<1x1x1x16xf32>
    %48 = vector.shape_cast %47 : vector<1x1x1x16xf32> to vector<1x16xf32>
    %49 = vector.broadcast %48 : vector<1x16xf32> to vector<17x16xf32>
    %50 = arith.addf %46, %49 : vector<17x16xf32>
    %51 = arith.truncf %36 : vector<17x16xf32> to vector<17x16xbf16>
    %52 = arith.truncf %43 : vector<17x16xf32> to vector<17x16xbf16>
    %cst_39 = arith.constant dense<0.000000e+00> : vector<17x17xf32>
    %53 = tpu.matmul %51, %52, %cst_39 {dimension_numbers = #tpu.dot_dimension_numbers<[1], [1], [0], [0], [0, 0, 1, 0], [], []>} : vector<17x16xbf16>, vector<17x16xbf16>, vector<17x17xf32> -> vector<17x17xf32>
    %cst_40 = arith.constant 2.500000e-01 : f32
    %54 = vector.broadcast %cst_40 : f32 to vector<17x17xf32>
    %55 = arith.mulf %53, %54 : vector<17x17xf32>
    %cst_41 = arith.constant dense<0xFF800000> : vector<17xf32>
    %56 = vector.multi_reduction <maximumf>, %55, %cst_41 [1] : vector<17x17xf32> to vector<17xf32>
    %57 = vector.shape_cast %56 : vector<17xf32> to vector<17x1xf32>
    %58 = vector.broadcast %57 : vector<17x1xf32> to vector<17x17xf32>
    %59 = arith.subf %55, %58 : vector<17x17xf32>
    %60 = math.exp %59 : vector<17x17xf32>
    %cst_42 = arith.constant dense<0.000000e+00> : vector<17xf32>
    %61 = vector.multi_reduction <add>, %60, %cst_42 [1] : vector<17x17xf32> to vector<17xf32>
    %62 = vector.shape_cast %61 : vector<17xf32> to vector<17x1xf32>
    %63 = tpu.reciprocal %62 {approx = true} : vector<17x1xf32> -> vector<17x1xf32>
    %64 = vector.broadcast %63 : vector<17x1xf32> to vector<17x17xf32>
    %65 = arith.mulf %60, %64 : vector<17x17xf32>
    %66 = arith.truncf %65 : vector<17x17xf32> to vector<17x17xbf16>
    %67 = arith.truncf %50 : vector<17x16xf32> to vector<17x16xbf16>
    %cst_43 = arith.constant dense<0.000000e+00> : vector<17x16xf32>
    %68 = tpu.matmul %66, %67, %cst_43 {dimension_numbers = #tpu.dot_dimension_numbers<[1], [0], [0], [1], [0, 0, 1, 1], [], []>} : vector<17x17xbf16>, vector<17x16xbf16>, vector<17x16xf32> -> vector<17x16xf32>
    %69 = arith.truncf %68 : vector<17x16xf32> to vector<17x16xbf16>
    %c0_44 = arith.constant 0 : index
    %c0_45 = arith.constant 0 : index
    %c0_46 = arith.constant 0 : index
    %c0_47 = arith.constant 0 : index
    %70 = vector.load %arg7[%c0_44, %c0_45, %c0_46, %c0_47] : memref<1x2x16x32xbf16, #tpu.memory_space<vmem>>, vector<1x1x16x32xbf16>
    %71 = vector.shape_cast %70 : vector<1x1x16x32xbf16> to vector<16x32xbf16>
    %cst_48 = arith.constant dense<0.000000e+00> : vector<17x32xf32>
    %72 = tpu.matmul %69, %71, %cst_48 {dimension_numbers = #tpu.dot_dimension_numbers<[1], [0], [0], [1], [0, 0, 1, 1], [], []>} : vector<17x16xbf16>, vector<16x32xbf16>, vector<17x32xf32> -> vector<17x32xf32>
    %73 = arith.addf %29, %72 : vector<17x32xf32>
    %c0_49 = arith.constant 0 : index
    %c1 = arith.constant 1 : index
    %c0_50 = arith.constant 0 : index
    %c0_51 = arith.constant 0 : index
    %74 = vector.load %arg5[%c0_49, %c1, %c0_50, %c0_51] : memref<1x6x32x16xbf16, #tpu.memory_space<vmem>>, vector<1x1x32x16xbf16>
    %75 = vector.shape_cast %74 : vector<1x1x32x16xbf16> to vector<32x16xbf16>
    %cst_52 = arith.constant dense<0.000000e+00> : vector<17x16xf32>
    %76 = tpu.matmul %28, %75, %cst_52 {dimension_numbers = #tpu.dot_dimension_numbers<[1], [0], [0], [1], [0, 0, 1, 1], [], []>} : vector<17x32xbf16>, vector<32x16xbf16>, vector<17x16xf32> -> vector<17x16xf32>
    %c0_53 = arith.constant 0 : index
    %c1_54 = arith.constant 1 : index
    %c0_55 = arith.constant 0 : index
    %c0_56 = arith.constant 0 : index
    %77 = vector.load %arg6[%c0_53, %c1_54, %c0_55, %c0_56] : memref<1x6x1x16xf32, #tpu.memory_space<vmem>>, vector<1x1x1x16xf32>
    %78 = vector.shape_cast %77 : vector<1x1x1x16xf32> to vector<1x16xf32>
    %79 = vector.broadcast %78 : vector<1x16xf32> to vector<17x16xf32>
    %80 = arith.addf %76, %79 : vector<17x16xf32>
    %c0_57 = arith.constant 0 : index
    %c3 = arith.constant 3 : index
    %c0_58 = arith.constant 0 : index
    %c0_59 = arith.constant 0 : index
    %81 = vector.load %arg5[%c0_57, %c3, %c0_58, %c0_59] : memref<1x6x32x16xbf16, #tpu.memory_space<vmem>>, vector<1x1x32x16xbf16>
    %82 = vector.shape_cast %81 : vector<1x1x32x16xbf16> to vector<32x16xbf16>
    %cst_60 = arith.constant dense<0.000000e+00> : vector<17x16xf32>
    %83 = tpu.matmul %28, %82, %cst_60 {dimension_numbers = #tpu.dot_dimension_numbers<[1], [0], [0], [1], [0, 0, 1, 1], [], []>} : vector<17x32xbf16>, vector<32x16xbf16>, vector<17x16xf32> -> vector<17x16xf32>
    %c0_61 = arith.constant 0 : index
    %c3_62 = arith.constant 3 : index
    %c0_63 = arith.constant 0 : index
    %c0_64 = arith.constant 0 : index
    %84 = vector.load %arg6[%c0_61, %c3_62, %c0_63, %c0_64] : memref<1x6x1x16xf32, #tpu.memory_space<vmem>>, vector<1x1x1x16xf32>
    %85 = vector.shape_cast %84 : vector<1x1x1x16xf32> to vector<1x16xf32>
    %86 = vector.broadcast %85 : vector<1x16xf32> to vector<17x16xf32>
    %87 = arith.addf %83, %86 : vector<17x16xf32>
    %c0_65 = arith.constant 0 : index
    %c5 = arith.constant 5 : index
    %c0_66 = arith.constant 0 : index
    %c0_67 = arith.constant 0 : index
    %88 = vector.load %arg5[%c0_65, %c5, %c0_66, %c0_67] : memref<1x6x32x16xbf16, #tpu.memory_space<vmem>>, vector<1x1x32x16xbf16>
    %89 = vector.shape_cast %88 : vector<1x1x32x16xbf16> to vector<32x16xbf16>
    %cst_68 = arith.constant dense<0.000000e+00> : vector<17x16xf32>
    %90 = tpu.matmul %28, %89, %cst_68 {dimension_numbers = #tpu.dot_dimension_numbers<[1], [0], [0], [1], [0, 0, 1, 1], [], []>} : vector<17x32xbf16>, vector<32x16xbf16>, vector<17x16xf32> -> vector<17x16xf32>
    %c0_69 = arith.constant 0 : index
    %c5_70 = arith.constant 5 : index
    %c0_71 = arith.constant 0 : index
    %c0_72 = arith.constant 0 : index
    %91 = vector.load %arg6[%c0_69, %c5_70, %c0_71, %c0_72] : memref<1x6x1x16xf32, #tpu.memory_space<vmem>>, vector<1x1x1x16xf32>
    %92 = vector.shape_cast %91 : vector<1x1x1x16xf32> to vector<1x16xf32>
    %93 = vector.broadcast %92 : vector<1x16xf32> to vector<17x16xf32>
    %94 = arith.addf %90, %93 : vector<17x16xf32>
    %95 = arith.truncf %80 : vector<17x16xf32> to vector<17x16xbf16>
    %96 = arith.truncf %87 : vector<17x16xf32> to vector<17x16xbf16>
    %cst_73 = arith.constant dense<0.000000e+00> : vector<17x17xf32>
    %97 = tpu.matmul %95, %96, %cst_73 {dimension_numbers = #tpu.dot_dimension_numbers<[1], [1], [0], [0], [0, 0, 1, 0], [], []>} : vector<17x16xbf16>, vector<17x16xbf16>, vector<17x17xf32> -> vector<17x17xf32>
    %cst_74 = arith.constant 2.500000e-01 : f32
    %98 = vector.broadcast %cst_74 : f32 to vector<17x17xf32>
    %99 = arith.mulf %97, %98 : vector<17x17xf32>
    %cst_75 = arith.constant dense<0xFF800000> : vector<17xf32>
    %100 = vector.multi_reduction <maximumf>, %99, %cst_75 [1] : vector<17x17xf32> to vector<17xf32>
    %101 = vector.shape_cast %100 : vector<17xf32> to vector<17x1xf32>
    %102 = vector.broadcast %101 : vector<17x1xf32> to vector<17x17xf32>
    %103 = arith.subf %99, %102 : vector<17x17xf32>
    %104 = math.exp %103 : vector<17x17xf32>
    %cst_76 = arith.constant dense<0.000000e+00> : vector<17xf32>
    %105 = vector.multi_reduction <add>, %104, %cst_76 [1] : vector<17x17xf32> to vector<17xf32>
    %106 = vector.shape_cast %105 : vector<17xf32> to vector<17x1xf32>
    %107 = tpu.reciprocal %106 {approx = true} : vector<17x1xf32> -> vector<17x1xf32>
    %108 = vector.broadcast %107 : vector<17x1xf32> to vector<17x17xf32>
    %109 = arith.mulf %104, %108 : vector<17x17xf32>
    %110 = arith.truncf %109 : vector<17x17xf32> to vector<17x17xbf16>
    %111 = arith.truncf %94 : vector<17x16xf32> to vector<17x16xbf16>
    %cst_77 = arith.constant dense<0.000000e+00> : vector<17x16xf32>
    %112 = tpu.matmul %110, %111, %cst_77 {dimension_numbers = #tpu.dot_dimension_numbers<[1], [0], [0], [1], [0, 0, 1, 1], [], []>} : vector<17x17xbf16>, vector<17x16xbf16>, vector<17x16xf32> -> vector<17x16xf32>
    %113 = arith.truncf %112 : vector<17x16xf32> to vector<17x16xbf16>
    %c0_78 = arith.constant 0 : index
    %c1_79 = arith.constant 1 : index
    %c0_80 = arith.constant 0 : index
    %c0_81 = arith.constant 0 : index
    %114 = vector.load %arg7[%c0_78, %c1_79, %c0_80, %c0_81] : memref<1x2x16x32xbf16, #tpu.memory_space<vmem>>, vector<1x1x16x32xbf16>
    %115 = vector.shape_cast %114 : vector<1x1x16x32xbf16> to vector<16x32xbf16>
    %cst_82 = arith.constant dense<0.000000e+00> : vector<17x32xf32>
    %116 = tpu.matmul %113, %115, %cst_82 {dimension_numbers = #tpu.dot_dimension_numbers<[1], [0], [0], [1], [0, 0, 1, 1], [], []>} : vector<17x16xbf16>, vector<16x32xbf16>, vector<17x32xf32> -> vector<17x32xf32>
    %117 = arith.addf %73, %116 : vector<17x32xf32>
    %c0_83 = arith.constant 0 : index
    %c0_84 = arith.constant 0 : index
    %c0_85 = arith.constant 0 : index
    %118 = vector.load %arg8[%c0_83, %c0_84, %c0_85] : memref<1x1x32xf32, #tpu.memory_space<vmem>>, vector<1x1x32xf32>
    %119 = vector.shape_cast %118 : vector<1x1x32xf32> to vector<1x32xf32>
    %120 = vector.broadcast %119 : vector<1x32xf32> to vector<17x32xf32>
    %121 = arith.addf %117, %120 : vector<17x32xf32>
    %122 = arith.addf %1, %121 : vector<17x32xf32>
    %c0_86 = arith.constant 0 : index
    %c0_87 = arith.constant 0 : index
    %c0_88 = arith.constant 0 : index
    %c0_89 = arith.constant 0 : index
    %123 = vector.load %arg9[%c0_86, %c0_87, %c0_88, %c0_89] : memref<1x1x17x32xf32, #tpu.memory_space<vmem>>, vector<1x1x17x32xf32>
    %124 = vector.shape_cast %123 : vector<1x1x17x32xf32> to vector<17x32xf32>
    %125 = vector.shape_cast %122 : vector<17x32xf32> to vector<1x1x17x32xf32>
    tpu.vector_store %arg9[%c0_86, %c0_87, %c0_88, %c0_89], %125 {strides = array<i32>} : memref<1x1x17x32xf32, #tpu.memory_space<vmem>>, vector<1x1x17x32xf32>,
    return
  }
  func.func @transform_0(%arg0: i32, %arg1: i32) -> (i32, i32, i32, i32) {
    %c0_i32 = arith.constant 0 : i32
    %c0_i32_0 = arith.constant 0 : i32
    %c0_i32_1 = arith.constant 0 : i32
    return %arg0, %arg1, %c0_i32, %c0_i32_0 : i32, i32, i32, i32
  }
  func.func @transform_1(%arg0: i32, %arg1: i32) -> (i32, i32, i32) {
    %c0_i32 = arith.constant 0 : i32
    %c0_i32_0 = arith.constant 0 : i32
    %c0_i32_1 = arith.constant 0 : i32
    return %arg0, %c0_i32, %c0_i32_0 : i32, i32, i32
  }
  func.func @transform_2(%arg0: i32, %arg1: i32) -> (i32, i32, i32) {
    %c0_i32 = arith.constant 0 : i32
    %c0_i32_0 = arith.constant 0 : i32
    %c0_i32_1 = arith.constant 0 : i32
    return %arg0, %c0_i32, %c0_i32_0 : i32, i32, i32
  }
  func.func @transform_3(%arg0: i32, %arg1: i32) -> (i32, i32, i32, i32) {
    %c0_i32 = arith.constant 0 : i32
    %c0_i32_0 = arith.constant 0 : i32
    %c0_i32_1 = arith.constant 0 : i32
    %c0_i32_2 = arith.constant 0 : i32
    return %arg0, %c0_i32, %c0_i32_0, %c0_i32_1 : i32, i32, i32, i32
  }
  func.func @transform_4(%arg0: i32, %arg1: i32) -> (i32, i32, i32, i32) {
    %c0_i32 = arith.constant 0 : i32
    %c0_i32_0 = arith.constant 0 : i32
    %c0_i32_1 = arith.constant 0 : i32
    %c0_i32_2 = arith.constant 0 : i32
    return %arg0, %c0_i32, %c0_i32_0, %c0_i32_1 : i32, i32, i32, i32
  }
  func.func @transform_5(%arg0: i32, %arg1: i32) -> (i32, i32, i32, i32) {
    %c0_i32 = arith.constant 0 : i32
    %c0_i32_0 = arith.constant 0 : i32
    %c0_i32_1 = arith.constant 0 : i32
    %c0_i32_2 = arith.constant 0 : i32
    return %arg0, %c0_i32, %c0_i32_0, %c0_i32_1 : i32, i32, i32, i32
  }
  func.func @transform_6(%arg0: i32, %arg1: i32) -> (i32, i32, i32) {
    %c0_i32 = arith.constant 0 : i32
    %c0_i32_0 = arith.constant 0 : i32
    %c0_i32_1 = arith.constant 0 : i32
    return %arg0, %c0_i32, %c0_i32_0 : i32, i32, i32
  }
  func.func @transform_7(%arg0: i32, %arg1: i32) -> (i32, i32, i32, i32) {
    %c0_i32 = arith.constant 0 : i32
    %c0_i32_0 = arith.constant 0 : i32
    %c0_i32_1 = arith.constant 0 : i32
    return %arg0, %arg1, %c0_i32, %c0_i32_0 : i32, i32, i32, i32
  }
}

module attributes {stable_mosaic.version = 11 : i64} {
  func.func @_mlp_kernel(%arg0: i32, %arg1: i32, %arg2: memref<1x1x17x32xf32, #tpu.memory_space<vmem>>, %arg3: memref<1x1x32xf32, #tpu.memory_space<vmem>>, %arg4: memref<1x1x32xf32, #tpu.memory_space<vmem>>, %arg5: memref<1x32x64xbf16, #tpu.memory_space<vmem>>, %arg6: memref<1x1x64xf32, #tpu.memory_space<vmem>>, %arg7: memref<1x64x32xbf16, #tpu.memory_space<vmem>>, %arg8: memref<1x1x32xf32, #tpu.memory_space<vmem>>, %arg9: memref<1x1x32xf32, #tpu.memory_space<vmem>>, %arg10: memref<1x1x32xf32, #tpu.memory_space<vmem>>, %arg11: memref<1x1x17x32xf32, #tpu.memory_space<vmem>>) attributes {dimension_semantics = [#tpu.dimension_semantics<parallel>, #tpu.dimension_semantics<parallel>], iteration_bounds = array<i64: 3, 2>, scalar_prefetch = 0 : i64, scratch_operands = 0 : i64, tpu.core_type = #tpu.core_type<tc>, window_params = [{transform_indices = @transform_0, window_bounds = array<i64: 1, 1, 17, 32>}, {transform_indices = @transform_1, window_bounds = array<i64: 1, 1, 32>}, {transform_indices = @transform_2, window_bounds = array<i64: 1, 1, 32>}, {transform_indices = @transform_3, window_bounds = array<i64: 1, 32, 64>}, {transform_indices = @transform_4, window_bounds = array<i64: 1, 1, 64>}, {transform_indices = @transform_5, window_bounds = array<i64: 1, 64, 32>}, {transform_indices = @transform_6, window_bounds = array<i64: 1, 1, 32>}, {transform_indices = @transform_7, window_bounds = array<i64: 1, 1, 32>}, {transform_indices = @transform_8, window_bounds = array<i64: 1, 1, 32>}, {transform_indices = @transform_9, window_bounds = array<i64: 1, 1, 17, 32>}]} {
    %c0 = arith.constant 0 : index
    %c0_0 = arith.constant 0 : index
    %c0_1 = arith.constant 0 : index
    %c0_2 = arith.constant 0 : index
    %0 = vector.load %arg2[%c0, %c0_0, %c0_1, %c0_2] : memref<1x1x17x32xf32, #tpu.memory_space<vmem>>, vector<1x1x17x32xf32>
    %1 = vector.shape_cast %0 : vector<1x1x17x32xf32> to vector<17x32xf32>
    %c0_3 = arith.constant 0 : index
    %c0_4 = arith.constant 0 : index
    %c0_5 = arith.constant 0 : index
    %2 = vector.load %arg3[%c0_3, %c0_4, %c0_5] : memref<1x1x32xf32, #tpu.memory_space<vmem>>, vector<1x1x32xf32>
    %3 = vector.shape_cast %2 : vector<1x1x32xf32> to vector<1x32xf32>
    %c0_6 = arith.constant 0 : index
    %c0_7 = arith.constant 0 : index
    %c0_8 = arith.constant 0 : index
    %4 = vector.load %arg4[%c0_6, %c0_7, %c0_8] : memref<1x1x32xf32, #tpu.memory_space<vmem>>, vector<1x1x32xf32>
    %5 = vector.shape_cast %4 : vector<1x1x32xf32> to vector<1x32xf32>
    %cst = arith.constant dense<0.000000e+00> : vector<17xf32>
    %6 = vector.multi_reduction <add>, %1, %cst [1] : vector<17x32xf32> to vector<17xf32>
    %7 = vector.shape_cast %6 : vector<17xf32> to vector<17x1xf32>
    %cst_9 = arith.constant 3.200000e+01 : f32
    %8 = vector.broadcast %cst_9 : f32 to vector<17x1xf32>
    %9 = arith.divf %7, %8 : vector<17x1xf32>
    %10 = vector.broadcast %9 : vector<17x1xf32> to vector<17x32xf32>
    %11 = arith.subf %1, %10 : vector<17x32xf32>
    %12 = arith.mulf %11, %11 : vector<17x32xf32>
    %cst_10 = arith.constant dense<0.000000e+00> : vector<17xf32>
    %13 = vector.multi_reduction <add>, %12, %cst_10 [1] : vector<17x32xf32> to vector<17xf32>
    %14 = vector.shape_cast %13 : vector<17xf32> to vector<17x1xf32>
    %cst_11 = arith.constant 3.200000e+01 : f32
    %15 = vector.broadcast %cst_11 : f32 to vector<17x1xf32>
    %16 = arith.divf %14, %15 : vector<17x1xf32>
    %17 = vector.broadcast %9 : vector<17x1xf32> to vector<17x32xf32>
    %18 = arith.subf %1, %17 : vector<17x32xf32>
    %cst_12 = arith.constant 9.99999997E-7 : f32
    %19 = vector.broadcast %cst_12 : f32 to vector<17x1xf32>
    %20 = arith.addf %16, %19 : vector<17x1xf32>
    %21 = math.rsqrt %20 : vector<17x1xf32>
    %22 = vector.broadcast %21 : vector<17x1xf32> to vector<17x32xf32>
    %23 = arith.mulf %18, %22 : vector<17x32xf32>
    %24 = vector.broadcast %3 : vector<1x32xf32> to vector<17x32xf32>
    %25 = arith.mulf %23, %24 : vector<17x32xf32>
    %26 = vector.broadcast %5 : vector<1x32xf32> to vector<17x32xf32>
    %27 = arith.addf %25, %26 : vector<17x32xf32>
    %28 = arith.truncf %27 : vector<17x32xf32> to vector<17x32xbf16>
    %c0_13 = arith.constant 0 : index
    %c0_14 = arith.constant 0 : index
    %c0_15 = arith.constant 0 : index
    %29 = vector.load %arg5[%c0_13, %c0_14, %c0_15] : memref<1x32x64xbf16, #tpu.memory_space<vmem>>, vector<1x32x64xbf16>
    %30 = vector.shape_cast %29 : vector<1x32x64xbf16> to vector<32x64xbf16>
    %cst_16 = arith.constant dense<0.000000e+00> : vector<17x64xf32>
    %31 = tpu.matmul %28, %30, %cst_16 {dimension_numbers = #tpu.dot_dimension_numbers<[1], [0], [0], [1], [0, 0, 1, 1], [], []>} : vector<17x32xbf16>, vector<32x64xbf16>, vector<17x64xf32> -> vector<17x64xf32>
    %c0_17 = arith.constant 0 : index
    %c0_18 = arith.constant 0 : index
    %c0_19 = arith.constant 0 : index
    %32 = vector.load %arg6[%c0_17, %c0_18, %c0_19] : memref<1x1x64xf32, #tpu.memory_space<vmem>>, vector<1x1x64xf32>
    %33 = vector.shape_cast %32 : vector<1x1x64xf32> to vector<1x64xf32>
    %34 = vector.broadcast %33 : vector<1x64xf32> to vector<17x64xf32>
    %35 = arith.addf %31, %34 : vector<17x64xf32>
    %36 = arith.mulf %35, %35 : vector<17x64xf32>
    %37 = arith.mulf %35, %36 : vector<17x64xf32>
    %cst_20 = arith.constant 4.471500e-02 : f32
    %38 = vector.broadcast %cst_20 : f32 to vector<17x64xf32>
    %39 = arith.mulf %38, %37 : vector<17x64xf32>
    %40 = arith.addf %35, %39 : vector<17x64xf32>
    %cst_21 = arith.constant 0.797884583 : f32
    %41 = vector.broadcast %cst_21 : f32 to vector<17x64xf32>
    %42 = arith.mulf %41, %40 : vector<17x64xf32>
    %43 = math.tanh %42 : vector<17x64xf32>
    %cst_22 = arith.constant 1.000000e+00 : f32
    %44 = vector.broadcast %cst_22 : f32 to vector<17x64xf32>
    %45 = arith.addf %44, %43 : vector<17x64xf32>
    %cst_23 = arith.constant 5.000000e-01 : f32
    %46 = vector.broadcast %cst_23 : f32 to vector<17x64xf32>
    %47 = arith.mulf %46, %45 : vector<17x64xf32>
    %48 = arith.mulf %35, %47 : vector<17x64xf32>
    %49 = arith.truncf %48 : vector<17x64xf32> to vector<17x64xbf16>
    %c0_24 = arith.constant 0 : index
    %c0_25 = arith.constant 0 : index
    %c0_26 = arith.constant 0 : index
    %50 = vector.load %arg7[%c0_24, %c0_25, %c0_26] : memref<1x64x32xbf16, #tpu.memory_space<vmem>>, vector<1x64x32xbf16>
    %51 = vector.shape_cast %50 : vector<1x64x32xbf16> to vector<64x32xbf16>
    %cst_27 = arith.constant dense<0.000000e+00> : vector<17x32xf32>
    %52 = tpu.matmul %49, %51, %cst_27 {dimension_numbers = #tpu.dot_dimension_numbers<[1], [0], [0], [1], [0, 0, 1, 1], [], []>} : vector<17x64xbf16>, vector<64x32xbf16>, vector<17x32xf32> -> vector<17x32xf32>
    %c0_28 = arith.constant 0 : index
    %c0_29 = arith.constant 0 : index
    %c0_30 = arith.constant 0 : index
    %53 = vector.load %arg8[%c0_28, %c0_29, %c0_30] : memref<1x1x32xf32, #tpu.memory_space<vmem>>, vector<1x1x32xf32>
    %54 = vector.shape_cast %53 : vector<1x1x32xf32> to vector<1x32xf32>
    %55 = vector.broadcast %54 : vector<1x32xf32> to vector<17x32xf32>
    %56 = arith.addf %52, %55 : vector<17x32xf32>
    %57 = arith.addf %1, %56 : vector<17x32xf32>
    %c0_31 = arith.constant 0 : index
    %c0_32 = arith.constant 0 : index
    %c0_33 = arith.constant 0 : index
    %c0_34 = arith.constant 0 : index
    %58 = vector.load %arg11[%c0_31, %c0_32, %c0_33, %c0_34] : memref<1x1x17x32xf32, #tpu.memory_space<vmem>>, vector<1x1x17x32xf32>
    %59 = vector.shape_cast %58 : vector<1x1x17x32xf32> to vector<17x32xf32>
    %60 = vector.shape_cast %57 : vector<17x32xf32> to vector<1x1x17x32xf32>
    tpu.vector_store %arg11[%c0_31, %c0_32, %c0_33, %c0_34], %60 {strides = array<i32>} : memref<1x1x17x32xf32, #tpu.memory_space<vmem>>, vector<1x1x17x32xf32>,
    return
  }
  func.func @transform_0(%arg0: i32, %arg1: i32) -> (i32, i32, i32, i32) {
    %c0_i32 = arith.constant 0 : i32
    %c0_i32_0 = arith.constant 0 : i32
    %c0_i32_1 = arith.constant 0 : i32
    return %arg0, %arg1, %c0_i32, %c0_i32_0 : i32, i32, i32, i32
  }
  func.func @transform_1(%arg0: i32, %arg1: i32) -> (i32, i32, i32) {
    %c0_i32 = arith.constant 0 : i32
    %c0_i32_0 = arith.constant 0 : i32
    %c0_i32_1 = arith.constant 0 : i32
    return %arg0, %c0_i32, %c0_i32_0 : i32, i32, i32
  }
  func.func @transform_2(%arg0: i32, %arg1: i32) -> (i32, i32, i32) {
    %c0_i32 = arith.constant 0 : i32
    %c0_i32_0 = arith.constant 0 : i32
    %c0_i32_1 = arith.constant 0 : i32
    return %arg0, %c0_i32, %c0_i32_0 : i32, i32, i32
  }
  func.func @transform_3(%arg0: i32, %arg1: i32) -> (i32, i32, i32) {
    %c0_i32 = arith.constant 0 : i32
    %c0_i32_0 = arith.constant 0 : i32
    %c0_i32_1 = arith.constant 0 : i32
    return %arg0, %c0_i32, %c0_i32_0 : i32, i32, i32
  }
  func.func @transform_4(%arg0: i32, %arg1: i32) -> (i32, i32, i32) {
    %c0_i32 = arith.constant 0 : i32
    %c0_i32_0 = arith.constant 0 : i32
    %c0_i32_1 = arith.constant 0 : i32
    return %arg0, %c0_i32, %c0_i32_0 : i32, i32, i32
  }
  func.func @transform_5(%arg0: i32, %arg1: i32) -> (i32, i32, i32) {
    %c0_i32 = arith.constant 0 : i32
    %c0_i32_0 = arith.constant 0 : i32
    %c0_i32_1 = arith.constant 0 : i32
    return %arg0, %c0_i32, %c0_i32_0 : i32, i32, i32
  }
  func.func @transform_6(%arg0: i32, %arg1: i32) -> (i32, i32, i32) {
    %c0_i32 = arith.constant 0 : i32
    %c0_i32_0 = arith.constant 0 : i32
    %c0_i32_1 = arith.constant 0 : i32
    return %arg0, %c0_i32, %c0_i32_0 : i32, i32, i32
  }
  func.func @transform_7(%arg0: i32, %arg1: i32) -> (i32, i32, i32) {
    %c0_i32 = arith.constant 0 : i32
    %c0_i32_0 = arith.constant 0 : i32
    %c0_i32_1 = arith.constant 0 : i32
    return %arg0, %c0_i32, %c0_i32_0 : i32, i32, i32
  }
  func.func @transform_8(%arg0: i32, %arg1: i32) -> (i32, i32, i32) {
    %c0_i32 = arith.constant 0 : i32
    %c0_i32_0 = arith.constant 0 : i32
    %c0_i32_1 = arith.constant 0 : i32
    return %arg0, %c0_i32, %c0_i32_0 : i32, i32, i32
  }
  func.func @transform_9(%arg0: i32, %arg1: i32) -> (i32, i32, i32, i32) {
    %c0_i32 = arith.constant 0 : i32
    %c0_i32_0 = arith.constant 0 : i32
    %c0_i32_1 = arith.constant 0 : i32
    return %arg0, %arg1, %c0_i32, %c0_i32_0 : i32, i32, i32, i32
  }
}

module attributes {stable_mosaic.version = 11 : i64} {
  func.func @_mlp_kernel(%arg0: i32, %arg1: i32, %arg2: memref<1x1x17x32xf32, #tpu.memory_space<vmem>>, %arg3: memref<1x1x32xf32, #tpu.memory_space<vmem>>, %arg4: memref<1x1x32xf32, #tpu.memory_space<vmem>>, %arg5: memref<1x32x64xbf16, #tpu.memory_space<vmem>>, %arg6: memref<1x1x64xf32, #tpu.memory_space<vmem>>, %arg7: memref<1x64x32xbf16, #tpu.memory_space<vmem>>, %arg8: memref<1x1x32xf32, #tpu.memory_space<vmem>>, %arg9: memref<1x1x32xf32, #tpu.memory_space<vmem>>, %arg10: memref<1x1x32xf32, #tpu.memory_space<vmem>>, %arg11: memref<1x1x17x32xf32, #tpu.memory_space<vmem>>) attributes {dimension_semantics = [#tpu.dimension_semantics<parallel>, #tpu.dimension_semantics<parallel>], iteration_bounds = array<i64: 3, 2>, scalar_prefetch = 0 : i64, scratch_operands = 0 : i64, tpu.core_type = #tpu.core_type<tc>, window_params = [{transform_indices = @transform_0, window_bounds = array<i64: 1, 1, 17, 32>}, {transform_indices = @transform_1, window_bounds = array<i64: 1, 1, 32>}, {transform_indices = @transform_2, window_bounds = array<i64: 1, 1, 32>}, {transform_indices = @transform_3, window_bounds = array<i64: 1, 32, 64>}, {transform_indices = @transform_4, window_bounds = array<i64: 1, 1, 64>}, {transform_indices = @transform_5, window_bounds = array<i64: 1, 64, 32>}, {transform_indices = @transform_6, window_bounds = array<i64: 1, 1, 32>}, {transform_indices = @transform_7, window_bounds = array<i64: 1, 1, 32>}, {transform_indices = @transform_8, window_bounds = array<i64: 1, 1, 32>}, {transform_indices = @transform_9, window_bounds = array<i64: 1, 1, 17, 32>}]} {
    %c0 = arith.constant 0 : index
    %c0_0 = arith.constant 0 : index
    %c0_1 = arith.constant 0 : index
    %c0_2 = arith.constant 0 : index
    %0 = vector.load %arg2[%c0, %c0_0, %c0_1, %c0_2] : memref<1x1x17x32xf32, #tpu.memory_space<vmem>>, vector<1x1x17x32xf32>
    %1 = vector.shape_cast %0 : vector<1x1x17x32xf32> to vector<17x32xf32>
    %c0_3 = arith.constant 0 : index
    %c0_4 = arith.constant 0 : index
    %c0_5 = arith.constant 0 : index
    %2 = vector.load %arg3[%c0_3, %c0_4, %c0_5] : memref<1x1x32xf32, #tpu.memory_space<vmem>>, vector<1x1x32xf32>
    %3 = vector.shape_cast %2 : vector<1x1x32xf32> to vector<1x32xf32>
    %c0_6 = arith.constant 0 : index
    %c0_7 = arith.constant 0 : index
    %c0_8 = arith.constant 0 : index
    %4 = vector.load %arg4[%c0_6, %c0_7, %c0_8] : memref<1x1x32xf32, #tpu.memory_space<vmem>>, vector<1x1x32xf32>
    %5 = vector.shape_cast %4 : vector<1x1x32xf32> to vector<1x32xf32>
    %cst = arith.constant dense<0.000000e+00> : vector<17xf32>
    %6 = vector.multi_reduction <add>, %1, %cst [1] : vector<17x32xf32> to vector<17xf32>
    %7 = vector.shape_cast %6 : vector<17xf32> to vector<17x1xf32>
    %cst_9 = arith.constant 3.200000e+01 : f32
    %8 = vector.broadcast %cst_9 : f32 to vector<17x1xf32>
    %9 = arith.divf %7, %8 : vector<17x1xf32>
    %10 = vector.broadcast %9 : vector<17x1xf32> to vector<17x32xf32>
    %11 = arith.subf %1, %10 : vector<17x32xf32>
    %12 = arith.mulf %11, %11 : vector<17x32xf32>
    %cst_10 = arith.constant dense<0.000000e+00> : vector<17xf32>
    %13 = vector.multi_reduction <add>, %12, %cst_10 [1] : vector<17x32xf32> to vector<17xf32>
    %14 = vector.shape_cast %13 : vector<17xf32> to vector<17x1xf32>
    %cst_11 = arith.constant 3.200000e+01 : f32
    %15 = vector.broadcast %cst_11 : f32 to vector<17x1xf32>
    %16 = arith.divf %14, %15 : vector<17x1xf32>
    %17 = vector.broadcast %9 : vector<17x1xf32> to vector<17x32xf32>
    %18 = arith.subf %1, %17 : vector<17x32xf32>
    %cst_12 = arith.constant 9.99999997E-7 : f32
    %19 = vector.broadcast %cst_12 : f32 to vector<17x1xf32>
    %20 = arith.addf %16, %19 : vector<17x1xf32>
    %21 = math.rsqrt %20 : vector<17x1xf32>
    %22 = vector.broadcast %21 : vector<17x1xf32> to vector<17x32xf32>
    %23 = arith.mulf %18, %22 : vector<17x32xf32>
    %24 = vector.broadcast %3 : vector<1x32xf32> to vector<17x32xf32>
    %25 = arith.mulf %23, %24 : vector<17x32xf32>
    %26 = vector.broadcast %5 : vector<1x32xf32> to vector<17x32xf32>
    %27 = arith.addf %25, %26 : vector<17x32xf32>
    %28 = arith.truncf %27 : vector<17x32xf32> to vector<17x32xbf16>
    %c0_13 = arith.constant 0 : index
    %c0_14 = arith.constant 0 : index
    %c0_15 = arith.constant 0 : index
    %29 = vector.load %arg5[%c0_13, %c0_14, %c0_15] : memref<1x32x64xbf16, #tpu.memory_space<vmem>>, vector<1x32x64xbf16>
    %30 = vector.shape_cast %29 : vector<1x32x64xbf16> to vector<32x64xbf16>
    %cst_16 = arith.constant dense<0.000000e+00> : vector<17x64xf32>
    %31 = tpu.matmul %28, %30, %cst_16 {dimension_numbers = #tpu.dot_dimension_numbers<[1], [0], [0], [1], [0, 0, 1, 1], [], []>} : vector<17x32xbf16>, vector<32x64xbf16>, vector<17x64xf32> -> vector<17x64xf32>
    %c0_17 = arith.constant 0 : index
    %c0_18 = arith.constant 0 : index
    %c0_19 = arith.constant 0 : index
    %32 = vector.load %arg6[%c0_17, %c0_18, %c0_19] : memref<1x1x64xf32, #tpu.memory_space<vmem>>, vector<1x1x64xf32>
    %33 = vector.shape_cast %32 : vector<1x1x64xf32> to vector<1x64xf32>
    %34 = vector.broadcast %33 : vector<1x64xf32> to vector<17x64xf32>
    %35 = arith.addf %31, %34 : vector<17x64xf32>
    %36 = arith.mulf %35, %35 : vector<17x64xf32>
    %37 = arith.mulf %35, %36 : vector<17x64xf32>
    %cst_20 = arith.constant 4.471500e-02 : f32
    %38 = vector.broadcast %cst_20 : f32 to vector<17x64xf32>
    %39 = arith.mulf %38, %37 : vector<17x64xf32>
    %40 = arith.addf %35, %39 : vector<17x64xf32>
    %cst_21 = arith.constant 0.797884583 : f32
    %41 = vector.broadcast %cst_21 : f32 to vector<17x64xf32>
    %42 = arith.mulf %41, %40 : vector<17x64xf32>
    %43 = math.tanh %42 : vector<17x64xf32>
    %cst_22 = arith.constant 1.000000e+00 : f32
    %44 = vector.broadcast %cst_22 : f32 to vector<17x64xf32>
    %45 = arith.addf %44, %43 : vector<17x64xf32>
    %cst_23 = arith.constant 5.000000e-01 : f32
    %46 = vector.broadcast %cst_23 : f32 to vector<17x64xf32>
    %47 = arith.mulf %46, %45 : vector<17x64xf32>
    %48 = arith.mulf %35, %47 : vector<17x64xf32>
    %49 = arith.truncf %48 : vector<17x64xf32> to vector<17x64xbf16>
    %c0_24 = arith.constant 0 : index
    %c0_25 = arith.constant 0 : index
    %c0_26 = arith.constant 0 : index
    %50 = vector.load %arg7[%c0_24, %c0_25, %c0_26] : memref<1x64x32xbf16, #tpu.memory_space<vmem>>, vector<1x64x32xbf16>
    %51 = vector.shape_cast %50 : vector<1x64x32xbf16> to vector<64x32xbf16>
    %cst_27 = arith.constant dense<0.000000e+00> : vector<17x32xf32>
    %52 = tpu.matmul %49, %51, %cst_27 {dimension_numbers = #tpu.dot_dimension_numbers<[1], [0], [0], [1], [0, 0, 1, 1], [], []>} : vector<17x64xbf16>, vector<64x32xbf16>, vector<17x32xf32> -> vector<17x32xf32>
    %c0_28 = arith.constant 0 : index
    %c0_29 = arith.constant 0 : index
    %c0_30 = arith.constant 0 : index
    %53 = vector.load %arg8[%c0_28, %c0_29, %c0_30] : memref<1x1x32xf32, #tpu.memory_space<vmem>>, vector<1x1x32xf32>
    %54 = vector.shape_cast %53 : vector<1x1x32xf32> to vector<1x32xf32>
    %55 = vector.broadcast %54 : vector<1x32xf32> to vector<17x32xf32>
    %56 = arith.addf %52, %55 : vector<17x32xf32>
    %57 = arith.addf %1, %56 : vector<17x32xf32>
    %c0_31 = arith.constant 0 : index
    %c0_32 = arith.constant 0 : index
    %c0_33 = arith.constant 0 : index
    %58 = vector.load %arg9[%c0_31, %c0_32, %c0_33] : memref<1x1x32xf32, #tpu.memory_space<vmem>>, vector<1x1x32xf32>
    %59 = vector.shape_cast %58 : vector<1x1x32xf32> to vector<1x32xf32>
    %c0_34 = arith.constant 0 : index
    %c0_35 = arith.constant 0 : index
    %c0_36 = arith.constant 0 : index
    %60 = vector.load %arg10[%c0_34, %c0_35, %c0_36] : memref<1x1x32xf32, #tpu.memory_space<vmem>>, vector<1x1x32xf32>
    %61 = vector.shape_cast %60 : vector<1x1x32xf32> to vector<1x32xf32>
    %cst_37 = arith.constant dense<0.000000e+00> : vector<17xf32>
    %62 = vector.multi_reduction <add>, %57, %cst_37 [1] : vector<17x32xf32> to vector<17xf32>
    %63 = vector.shape_cast %62 : vector<17xf32> to vector<17x1xf32>
    %cst_38 = arith.constant 3.200000e+01 : f32
    %64 = vector.broadcast %cst_38 : f32 to vector<17x1xf32>
    %65 = arith.divf %63, %64 : vector<17x1xf32>
    %66 = vector.broadcast %65 : vector<17x1xf32> to vector<17x32xf32>
    %67 = arith.subf %57, %66 : vector<17x32xf32>
    %68 = arith.mulf %67, %67 : vector<17x32xf32>
    %cst_39 = arith.constant dense<0.000000e+00> : vector<17xf32>
    %69 = vector.multi_reduction <add>, %68, %cst_39 [1] : vector<17x32xf32> to vector<17xf32>
    %70 = vector.shape_cast %69 : vector<17xf32> to vector<17x1xf32>
    %cst_40 = arith.constant 3.200000e+01 : f32
    %71 = vector.broadcast %cst_40 : f32 to vector<17x1xf32>
    %72 = arith.divf %70, %71 : vector<17x1xf32>
    %73 = vector.broadcast %65 : vector<17x1xf32> to vector<17x32xf32>
    %74 = arith.subf %57, %73 : vector<17x32xf32>
    %cst_41 = arith.constant 9.99999997E-7 : f32
    %75 = vector.broadcast %cst_41 : f32 to vector<17x1xf32>
    %76 = arith.addf %72, %75 : vector<17x1xf32>
    %77 = math.rsqrt %76 : vector<17x1xf32>
    %78 = vector.broadcast %77 : vector<17x1xf32> to vector<17x32xf32>
    %79 = arith.mulf %74, %78 : vector<17x32xf32>
    %80 = vector.broadcast %59 : vector<1x32xf32> to vector<17x32xf32>
    %81 = arith.mulf %79, %80 : vector<17x32xf32>
    %82 = vector.broadcast %61 : vector<1x32xf32> to vector<17x32xf32>
    %83 = arith.addf %81, %82 : vector<17x32xf32>
    %c0_42 = arith.constant 0 : index
    %c0_43 = arith.constant 0 : index
    %c0_44 = arith.constant 0 : index
    %c0_45 = arith.constant 0 : index
    %84 = vector.load %arg11[%c0_42, %c0_43, %c0_44, %c0_45] : memref<1x1x17x32xf32, #tpu.memory_space<vmem>>, vector<1x1x17x32xf32>
    %85 = vector.shape_cast %84 : vector<1x1x17x32xf32> to vector<17x32xf32>
    %86 = vector.shape_cast %83 : vector<17x32xf32> to vector<1x1x17x32xf32>
    tpu.vector_store %arg11[%c0_42, %c0_43, %c0_44, %c0_45], %86 {strides = array<i32>} : memref<1x1x17x32xf32, #tpu.memory_space<vmem>>, vector<1x1x17x32xf32>,
    return
  }
  func.func @transform_0(%arg0: i32, %arg1: i32) -> (i32, i32, i32, i32) {
    %c0_i32 = arith.constant 0 : i32
    %c0_i32_0 = arith.constant 0 : i32
    %c0_i32_1 = arith.constant 0 : i32
    return %arg0, %arg1, %c0_i32, %c0_i32_0 : i32, i32, i32, i32
  }
  func.func @transform_1(%arg0: i32, %arg1: i32) -> (i32, i32, i32) {
    %c0_i32 = arith.constant 0 : i32
    %c0_i32_0 = arith.constant 0 : i32
    %c0_i32_1 = arith.constant 0 : i32
    return %arg0, %c0_i32, %c0_i32_0 : i32, i32, i32
  }
  func.func @transform_2(%arg0: i32, %arg1: i32) -> (i32, i32, i32) {
    %c0_i32 = arith.constant 0 : i32
    %c0_i32_0 = arith.constant 0 : i32
    %c0_i32_1 = arith.constant 0 : i32
    return %arg0, %c0_i32, %c0_i32_0 : i32, i32, i32
  }
  func.func @transform_3(%arg0: i32, %arg1: i32) -> (i32, i32, i32) {
    %c0_i32 = arith.constant 0 : i32
    %c0_i32_0 = arith.constant 0 : i32
    %c0_i32_1 = arith.constant 0 : i32
    return %arg0, %c0_i32, %c0_i32_0 : i32, i32, i32
  }
  func.func @transform_4(%arg0: i32, %arg1: i32) -> (i32, i32, i32) {
    %c0_i32 = arith.constant 0 : i32
    %c0_i32_0 = arith.constant 0 : i32
    %c0_i32_1 = arith.constant 0 : i32
    return %arg0, %c0_i32, %c0_i32_0 : i32, i32, i32
  }
  func.func @transform_5(%arg0: i32, %arg1: i32) -> (i32, i32, i32) {
    %c0_i32 = arith.constant 0 : i32
    %c0_i32_0 = arith.constant 0 : i32
    %c0_i32_1 = arith.constant 0 : i32
    return %arg0, %c0_i32, %c0_i32_0 : i32, i32, i32
  }
  func.func @transform_6(%arg0: i32, %arg1: i32) -> (i32, i32, i32) {
    %c0_i32 = arith.constant 0 : i32
    %c0_i32_0 = arith.constant 0 : i32
    %c0_i32_1 = arith.constant 0 : i32
    return %arg0, %c0_i32, %c0_i32_0 : i32, i32, i32
  }
  func.func @transform_7(%arg0: i32, %arg1: i32) -> (i32, i32, i32) {
    %c0_i32 = arith.constant 0 : i32
    %c0_i32_0 = arith.constant 0 : i32
    %c0_i32_1 = arith.constant 0 : i32
    return %arg0, %c0_i32, %c0_i32_0 : i32, i32, i32
  }
  func.func @transform_8(%arg0: i32, %arg1: i32) -> (i32, i32, i32) {
    %c0_i32 = arith.constant 0 : i32
    %c0_i32_0 = arith.constant 0 : i32
    %c0_i32_1 = arith.constant 0 : i32
    return %arg0, %c0_i32, %c0_i32_0 : i32, i32, i32
  }
  func.func @transform_9(%arg0: i32, %arg1: i32) -> (i32, i32, i32, i32) {
    %c0_i32 = arith.constant 0 : i32
    %c0_i32_0 = arith.constant 0 : i32
    %c0_i32_1 = arith.constant 0 : i32
    return %arg0, %arg1, %c0_i32, %c0_i32_0 : i32, i32, i32, i32
  }
}

module attributes {stable_mosaic.version = 11 : i64} {
  func.func @_decoder_kernel(%arg0: i32, %arg1: memref<3x1x17x32xf32, #tpu.memory_space<vmem>>, %arg2: memref<3x32x17xbf16, #tpu.memory_space<vmem>>, %arg3: memref<32x1xf32, #tpu.memory_space<vmem>>, %arg4: memref<32x1xf32, #tpu.memory_space<vmem>>, %arg5: memref<1x1xf32, #tpu.memory_space<vmem>>, %arg6: memref<1x1x32xf32, #tpu.memory_space<vmem>>) attributes {dimension_semantics = [#tpu.dimension_semantics<parallel>], iteration_bounds = array<i64: 2>, scalar_prefetch = 0 : i64, scratch_operands = 0 : i64, tpu.core_type = #tpu.core_type<tc>, window_params = [{transform_indices = @transform_0, window_bounds = array<i64: 3, 1, 17, 32>}, {pipeline_mode = #tpu.pipeline_mode<synchronous>, transform_indices = @transform_1, window_bounds = array<i64: 3, 32, 17>}, {pipeline_mode = #tpu.pipeline_mode<synchronous>, transform_indices = @transform_2, window_bounds = array<i64: 32, 1>}, {pipeline_mode = #tpu.pipeline_mode<synchronous>, transform_indices = @transform_3, window_bounds = array<i64: 32, 1>}, {pipeline_mode = #tpu.pipeline_mode<synchronous>, transform_indices = @transform_4, window_bounds = array<i64: 1, 1>}, {transform_indices = @transform_5, window_bounds = array<i64: 1, 1, 32>}]} {
    %cst = arith.constant 0.000000e+00 : f32
    %0 = vector.broadcast %cst : f32 to vector<32x32xf32>
    %c0 = arith.constant 0 : index
    %c0_0 = arith.constant 0 : index
    %c0_1 = arith.constant 0 : index
    %c0_2 = arith.constant 0 : index
    %1 = vector.load %arg1[%c0, %c0_0, %c0_1, %c0_2] : memref<3x1x17x32xf32, #tpu.memory_space<vmem>>, vector<1x1x17x32xf32>
    %2 = vector.shape_cast %1 : vector<1x1x17x32xf32> to vector<17x32xf32>
    %3 = arith.truncf %2 : vector<17x32xf32> to vector<17x32xbf16>
    %c0_3 = arith.constant 0 : index
    %c0_4 = arith.constant 0 : index
    %c0_5 = arith.constant 0 : index
    %4 = vector.load %arg2[%c0_3, %c0_4, %c0_5] : memref<3x32x17xbf16, #tpu.memory_space<vmem>>, vector<1x32x17xbf16>
    %5 = vector.shape_cast %4 : vector<1x32x17xbf16> to vector<32x17xbf16>
    %cst_6 = arith.constant dense<0.000000e+00> : vector<32x32xf32>
    %6 = tpu.matmul %5, %3, %cst_6 {dimension_numbers = #tpu.dot_dimension_numbers<[1], [0], [0], [1], [0, 0, 1, 1], [], []>} : vector<32x17xbf16>, vector<17x32xbf16>, vector<32x32xf32> -> vector<32x32xf32>
    %7 = arith.addf %0, %6 : vector<32x32xf32>
    %c1 = arith.constant 1 : index
    %c0_7 = arith.constant 0 : index
    %c0_8 = arith.constant 0 : index
    %c0_9 = arith.constant 0 : index
    %8 = vector.load %arg1[%c1, %c0_7, %c0_8, %c0_9] : memref<3x1x17x32xf32, #tpu.memory_space<vmem>>, vector<1x1x17x32xf32>
    %9 = vector.shape_cast %8 : vector<1x1x17x32xf32> to vector<17x32xf32>
    %10 = arith.truncf %9 : vector<17x32xf32> to vector<17x32xbf16>
    %c1_10 = arith.constant 1 : index
    %c0_11 = arith.constant 0 : index
    %c0_12 = arith.constant 0 : index
    %11 = vector.load %arg2[%c1_10, %c0_11, %c0_12] : memref<3x32x17xbf16, #tpu.memory_space<vmem>>, vector<1x32x17xbf16>
    %12 = vector.shape_cast %11 : vector<1x32x17xbf16> to vector<32x17xbf16>
    %cst_13 = arith.constant dense<0.000000e+00> : vector<32x32xf32>
    %13 = tpu.matmul %12, %10, %cst_13 {dimension_numbers = #tpu.dot_dimension_numbers<[1], [0], [0], [1], [0, 0, 1, 1], [], []>} : vector<32x17xbf16>, vector<17x32xbf16>, vector<32x32xf32> -> vector<32x32xf32>
    %14 = arith.addf %7, %13 : vector<32x32xf32>
    %c2 = arith.constant 2 : index
    %c0_14 = arith.constant 0 : index
    %c0_15 = arith.constant 0 : index
    %c0_16 = arith.constant 0 : index
    %15 = vector.load %arg1[%c2, %c0_14, %c0_15, %c0_16] : memref<3x1x17x32xf32, #tpu.memory_space<vmem>>, vector<1x1x17x32xf32>
    %16 = vector.shape_cast %15 : vector<1x1x17x32xf32> to vector<17x32xf32>
    %17 = arith.truncf %16 : vector<17x32xf32> to vector<17x32xbf16>
    %c2_17 = arith.constant 2 : index
    %c0_18 = arith.constant 0 : index
    %c0_19 = arith.constant 0 : index
    %18 = vector.load %arg2[%c2_17, %c0_18, %c0_19] : memref<3x32x17xbf16, #tpu.memory_space<vmem>>, vector<1x32x17xbf16>
    %19 = vector.shape_cast %18 : vector<1x32x17xbf16> to vector<32x17xbf16>
    %cst_20 = arith.constant dense<0.000000e+00> : vector<32x32xf32>
    %20 = tpu.matmul %19, %17, %cst_20 {dimension_numbers = #tpu.dot_dimension_numbers<[1], [0], [0], [1], [0, 0, 1, 1], [], []>} : vector<32x17xbf16>, vector<17x32xbf16>, vector<32x32xf32> -> vector<32x32xf32>
    %21 = arith.addf %14, %20 : vector<32x32xf32>
    %c0_21 = arith.constant 0 : index
    %c0_22 = arith.constant 0 : index
    %22 = vector.load %arg3[%c0_21, %c0_22] : memref<32x1xf32, #tpu.memory_space<vmem>>, vector<32x1xf32>
    %23 = vector.broadcast %22 : vector<32x1xf32> to vector<32x32xf32>
    %24 = arith.addf %21, %23 : vector<32x32xf32>
    %cst_23 = arith.constant 0.000000e+00 : f32
    %25 = vector.broadcast %cst_23 : f32 to vector<32x32xf32>
    %26 = arith.maximumf %24, %25 : vector<32x32xf32>
    %c0_24 = arith.constant 0 : index
    %c0_25 = arith.constant 0 : index
    %27 = vector.load %arg4[%c0_24, %c0_25] : memref<32x1xf32, #tpu.memory_space<vmem>>, vector<32x1xf32>
    %28 = vector.broadcast %27 : vector<32x1xf32> to vector<32x32xf32>
    %29 = arith.mulf %26, %28 : vector<32x32xf32>
    %cst_26 = arith.constant dense<0.000000e+00> : vector<32xf32>
    %30 = vector.multi_reduction <add>, %29, %cst_26 [0] : vector<32x32xf32> to vector<32xf32>
    %31 = vector.shape_cast %30 : vector<32xf32> to vector<1x32xf32>
    %c0_27 = arith.constant 0 : index
    %c0_28 = arith.constant 0 : index
    %32 = vector.load %arg5[%c0_27, %c0_28] : memref<1x1xf32, #tpu.memory_space<vmem>>, vector<1x1xf32>
    %33 = vector.broadcast %32 : vector<1x1xf32> to vector<1x32xf32>
    %34 = arith.addf %31, %33 : vector<1x32xf32>
    %c0_29 = arith.constant 0 : index
    %c0_30 = arith.constant 0 : index
    %c0_31 = arith.constant 0 : index
    %35 = vector.load %arg6[%c0_29, %c0_30, %c0_31] : memref<1x1x32xf32, #tpu.memory_space<vmem>>, vector<1x1x32xf32>
    %36 = vector.shape_cast %35 : vector<1x1x32xf32> to vector<1x32xf32>
    %37 = vector.shape_cast %34 : vector<1x32xf32> to vector<1x1x32xf32>
    tpu.vector_store %arg6[%c0_29, %c0_30, %c0_31], %37 {strides = array<i32>} : memref<1x1x32xf32, #tpu.memory_space<vmem>>, vector<1x1x32xf32>,
    return
  }
  func.func @transform_0(%arg0: i32) -> (i32, i32, i32, i32) {
    %c0_i32 = arith.constant 0 : i32
    %c0_i32_0 = arith.constant 0 : i32
    %c0_i32_1 = arith.constant 0 : i32
    %c0_i32_2 = arith.constant 0 : i32
    return %c0_i32, %arg0, %c0_i32_0, %c0_i32_1 : i32, i32, i32, i32
  }
  func.func @transform_1(%arg0: i32) -> (i32, i32, i32) {
    %c0_i32 = arith.constant 0 : i32
    %c0_i32_0 = arith.constant 0 : i32
    %c0_i32_1 = arith.constant 0 : i32
    %c0_i32_2 = arith.constant 0 : i32
    return %c0_i32, %c0_i32_0, %c0_i32_1 : i32, i32, i32
  }
  func.func @transform_2(%arg0: i32) -> (i32, i32) {
    %c0_i32 = arith.constant 0 : i32
    %c0_i32_0 = arith.constant 0 : i32
    %c0_i32_1 = arith.constant 0 : i32
    return %c0_i32, %c0_i32_0 : i32, i32
  }
  func.func @transform_3(%arg0: i32) -> (i32, i32) {
    %c0_i32 = arith.constant 0 : i32
    %c0_i32_0 = arith.constant 0 : i32
    %c0_i32_1 = arith.constant 0 : i32
    return %c0_i32, %c0_i32_0 : i32, i32
  }
  func.func @transform_4(%arg0: i32) -> (i32, i32) {
    %c0_i32 = arith.constant 0 : i32
    %c0_i32_0 = arith.constant 0 : i32
    %c0_i32_1 = arith.constant 0 : i32
    return %c0_i32, %c0_i32_0 : i32, i32
  }
  func.func @transform_5(%arg0: i32) -> (i32, i32, i32) {
    %c0_i32 = arith.constant 0 : i32
    %c0_i32_0 = arith.constant 0 : i32
    %c0_i32_1 = arith.constant 0 : i32
    return %arg0, %c0_i32, %c0_i32_0 : i32, i32, i32
  }
}

</mosaic_0001>

<bundles_post_ra>
// kernel: early_concat_forward.6
= control target key start
LH: loop header
LB: loop body
LE: loop exit
PB: predicated region body
PF: predicated region fallthrough
CT: control target
= control target key end

     0   :  { %s687_s18 = smov 0   ;;  %s689_s19 = smov 0   ;;  %s756_s0 = inlined_call_operand.vmem [shape: f32[2,16,48], index: 0, kind: input, shape index: {}]   ;;  %s757_s1 = inlined_call_operand.vmem [shape: bf16[3,48,32], index: 1, kind: input, shape index: {}]   ;;  %s758_s2 = inlined_call_operand.vmem [shape: f32[3,1,32], index: 2, kind: input, shape index: {}]   ;;  %s759_s3 = inlined_call_operand.vmem [shape: f32[3,1,32], index: 3, kind: input, shape index: {}]   ;;  %s760_s4 = inlined_call_operand.vmem [shape: f32[3,17,32], index: 4, kind: input, shape index: {}]   ;;  %s761_s5 = inlined_call_operand.vmem [shape: f32[3,2,17,32], index: 5, kind: output, shape index: {}]  }
   0x1   :  { %s691_s20 = smov 0   ;;  %s693_s21 = smov 0  }
   0x2   :  { %s695_s22 = smov 0  }
   0x3 LB: > { %s24_s23 = sadd.s32 1, %s645_s20  ;;  %s27_s24 = sadd.s32 1, %s649_s21  ;;  %s653_s22 = sphi %s695_s22, %s15_s22   ;;  %s649_s21 = sphi %s693_s21, %s765_s21   ;;  %s645_s20 = sphi %s691_s20, %s764_s20   ;;  %s641_s19 = sphi %s689_s19, %s763_s19   ;;  %s637_s18 = sphi %s687_s18, %s762_s18  }
   0x4   : > { %p25_p0 = scmp.ge.s32.totalorder %s24_s23, 2  ;;  %p539_p1 = scmp.ge.s32.totalorder %s653_s22, 1 }
   0x5   : > { %p237_p2 = scmp.lt.s32.totalorder %s653_s22, 7 }
   0x6   : > { %s767_s23 = smov (%p25_p0, %s24_s23), 0  ;;  %s769_s24 = smov (!%p25_p0, %s27_s24), %s649_s21 }
   0x7   : > { %p238_p3 = pnand %p539_p1, %p237_p2  ;;  %p29_p4 = scmp.ge.s32.totalorder %s769_s24, 3 }
   0x8   : > { %p290_p5 = scmp.lt.s32.totalorder (!%p238_p3), %s641_s19, 2  ;;  %p285_p6 = scmp.lt.s32.totalorder (!%p238_p3), %s637_s18, 1 }
   0x9   : > { %s771_s24 = smov (%p29_p4, %s769_s24), 0  ;;  %241 = sbr.rel (%p238_p3) target bundleno = 232 (0xe8), region = 40 }
   0xe   : > { %v655_v0 = vmov 0.0   ;;  %vm656_vm0 = vmmov 0   ;;  %s773_s19 = smov (!%p290_p5, %s641_s19), 2  ;;  %s775_s18 = smov (!%p285_p6, %s637_s18), 1  ;;  %vm350_vm1 = vcmask 392192   ;;  %vm402_vm2 = vcmask 253952  }
   0xf   : > { %557 = vmatprep.subr.bf16.mxu0 %v655_v0  ;;  %563 = vmatprep.mubr.msk.bf16.mxu0 %vm656_vm0, %v655_v0  ;;  %s567_s25 = smul.u32 24, %s773_s19  ;;  %s552_s29 = sshll.u32 %s775_s18, 4  ;;  %vm404_vm3 = vcmask 261120  }
  0x10   : > { %s568_s30 = smul.u32 3, %s775_s18  ;;  %s289_s9 = scalar_lea.vmem %s756_s0, %s552_s29 }
  0x11   : > { %s294_s28 = scalar_lea.vmem %s757_s1, %s567_s25  ;;  %s569_s6 = smul.u32 6, %s773_s19  ;;  %v316_v4 = vld [vmem:[%s289_s9] sm:$0xff]  ;;  %v317_v5 = vld [vmem:[%s289_s9 + $0x8] sm:$0xff] }
  0x12   : > { %v612_v1 = vld [vmem:[%s294_s28 + $0x10] sm:$0xff]   ;;  %v613_v2 = vld [vmem:[%s294_s28 + $0x8] sm:$0xff]   ;;  %v614_v3 = vld [vmem:[%s294_s28] sm:$0xff]   ;;  %v318_v6 = vpack.c.bf16 %v317_v5, %v316_v4  ;;  %s300_s13 = scalar_lea.vmem %s759_s3, %s773_s19  ;;  %s305_s16 = scalar_lea.vmem %s760_s4, %s567_s25 }
  0x13   : > { %558 = vmatpush3.bf16.msra.mxu0 %v612_v1  ;;  %s312_s10 = sadd.s32 %s569_s6, %s568_s30  ;;  %v399_v7 = vld [vmem:[%s300_s13] sm:$0x1]  ;;  %s297_s30 = scalar_lea.vmem %s758_s2, %s773_s19  ;;  %v395_v12 = vld [vmem:[%s305_s16 + $0x1] sm:$0xff]  ;;  %v396_v17 = vld [vmem:[%s305_s16 + $0x9] sm:$0xff] }
  0x14   : > { %559 = vmatprep.subr.bf16.mxu0 %v655_v0  ;;  %s544_s17 = sshll.u32 %s312_s10, 3  ;;  %v400_v8 = vld [vmem:[%s305_s16] sm:$0x1] }
  0x15   : > { %v401_v9 = vadd.f32 %v400_v8, %v399_v7  ;;  %s314_s27 = scalar_lea.vmem %s761_s5, %s544_s17  ;;  %v545_v10 = vld [vmem:[%s297_s30] ss:$0 sm:$0xff] }
  0x17   : > { %560 = vmatpush3.bf16.msra.mxu0 %v613_v2  ;;  %403 = vst.msk [vmem:[%s314_s27] sm:$0x1] %vm402_vm2, %v401_v9 }
  0x18   : > { %561 = vmatprep.subr.bf16.mxu0 %v655_v0 }
  0x1b   : > { %562 = vmatpush3.bf16.msra.mxu0 %v614_v3 }
  0x1e   : > { %564 = vmatmul.mubr.msk.bf16.vlgmr.msra.gmra.mxu0 %vm350_vm1, %v318_v6 }
  0xde   : > { %v388_v11 = vpop.f32.mrf.mxu0 }
  0xdf   : > { %v389_v13 = vadd.f32 %v545_v10, %v388_v11 }
  0xe0   : > { %v565_v14 = vpop.f32.mrf.mxu0 }
  0xe1   : > { %v397_v15 = vadd.f32 %v395_v12, %v389_v13 }
  0xe2   : > { %v391_v16 = vpop.f32.mrf.mxu0 }
  0xe3   : > { %405 = vst.msk [vmem:[%s314_s27 + $0x1] sm:$0xff] %vm404_vm3, %v397_v15  ;;  %v392_v18 = vadd.f32 %v545_v10, %v391_v16 }
  0xe4   : > { %v566_v19 = vpop.f32.mrf.mxu0 }
  0xe5   : > { %v398_v20 = vadd.f32 %v396_v17, %v392_v18 }
  0xe7   : > { %406 = vst.msk [vmem:[%s314_s27 + $0x9] sm:$0xff] %vm404_vm3, %v398_v20 }
  0xe8 PF: > { %s15_s22 = sadd.s32 1, %s653_s22   ;;  %s762_s18 = smov %s645_s20 }
  0xe9   : > { %p12_p7 = scmp.ge.s32.totalorder %s15_s22, 8   ;;  %s763_s19 = smov %s649_s21 }
  0xea   : > { %s764_s20 = smov %s767_s23  ;;  %s765_s21 = smov %s771_s24 }
  0xeb   :  { %14 = sbr.rel (!%p12_p7) target bundleno = 3 (0x3), region = 82 }

// kernel: early_concat_forward.8
= control target key start
LH: loop header
LB: loop body
LE: loop exit
PB: predicated region body
PF: predicated region fallthrough
CT: control target
= control target key end

     0   :  { %s1149_s30 = smov 0   ;;  %s1151_s10 = smov 0   ;;  %s1260_s0 = inlined_call_operand.vmem [shape: f32[3,2,17,32], index: 0, kind: input, shape index: {}]   ;;  %s1261_s1 = inlined_call_operand.vmem [shape: f32[3,1,32], index: 1, kind: input, shape index: {}]   ;;  %s1262_s2 = inlined_call_operand.vmem [shape: f32[3,1,32], index: 2, kind: input, shape index: {}]   ;;  %s1263_s3 = inlined_call_operand.vmem [shape: bf16[3,32,64], index: 3, kind: input, shape index: {}]   ;;  %s1264_s4 = inlined_call_operand.vmem [shape: f32[3,1,64], index: 4, kind: input, shape index: {}]   ;;  %s1265_s5 = inlined_call_operand.vmem [shape: bf16[3,64,32], index: 5, kind: input, shape index: {}]   ;;  %s1266_s6 = inlined_call_operand.vmem [shape: f32[3,1,32], index: 6, kind: input, shape index: {}]   ;;  %s1267_s7 = inlined_call_operand.vmem [shape: f32[3,1,32], index: 7, kind: input, shape index: {}]   ;;  %s1268_s8 = inlined_call_operand.vmem [shape: f32[3,1,32], index: 8, kind: input, shape index: {}]   ;;  %s1269_s9 = inlined_call_operand.vmem [shape: f32[3,2,17,32], index: 9, kind: output, shape index: {}]  }
   0x1   :  { %s1153_s11 = smov 0   ;;  %s1155_s12 = smov 0  }
   0x2   :  { %s1157_s13 = smov 0  }
   0x3 LB: > { %s28_s7 = sadd.s32 1, %s1089_s11  ;;  %s31_s8 = sadd.s32 1, %s1093_s12  ;;  %s1097_s13 = sphi %s1157_s13, %s19_s13   ;;  %s1093_s12 = sphi %s1155_s12, %s1273_s12   ;;  %s1089_s11 = sphi %s1153_s11, %s1272_s11   ;;  %s1085_s10 = sphi %s1151_s10, %s1271_s10   ;;  %s1081_s30 = sphi %s1149_s30, %s1270_s30  }
   0x4   : > { %p29_p0 = scmp.ge.s32.totalorder %s28_s7, 2  ;;  %p944_p1 = scmp.ge.s32.totalorder %s1097_s13, 1 }
   0x5   : > { %p375_p2 = scmp.lt.s32.totalorder %s1097_s13, 7 }
   0x6   : > { %s1275_s7 = smov (%p29_p0, %s28_s7), 0  ;;  %s1277_s8 = smov (!%p29_p0, %s31_s8), %s1093_s12 }
   0x7   : > { %p376_p3 = pnand %p944_p1, %p375_p2  ;;  %p33_p4 = scmp.ge.s32.totalorder %s1277_s8, 3 }
   0x8   : > { %p447_p5 = scmp.lt.s32.totalorder (!%p376_p3), %s1085_s10, 2  ;;  %p449_p6 = scmp.lt.s32.totalorder (!%p376_p3), %s1081_s30, 1 }
   0x9   : > { %s1279_s8 = smov (%p33_p4, %s1277_s8), 0  ;;  %379 = sbr.rel (%p376_p3) target bundleno = 776 (0x308), region = 56 }
   0xe   : > { %s1281_s10 = smov (!%p447_p5, %s1085_s10), 2  ;;  %s1283_s30 = smov (!%p449_p6, %s1081_s30), 1  ;;  %vm499_vm0 = vcmask 261120   ;;  %vm506_vm1 = vcmask 253952   ;;  %vm706_vm2 = vcmask 523264  }
   0xf   : > { %s1000_s14 = smul.u32 6, %s1281_s10  ;;  %s967_s21 = sshll.u32 %s1281_s10, 4 }
  0x10   : > { %s999_s15 = smul.u32 3, %s1283_s30  ;;  %s466_s24 = scalar_lea.vmem %s1263_s3, %s967_s21 }
  0x11   : > { %v1041_v21 = vld [vmem:[%s466_s24 + $0x8] sm:$0xff]   ;;  %v1042_v22 = vld [vmem:[%s466_s24] sm:$0xff]   ;;  %s458_s27 = scalar_lea.vmem %s1261_s1, %s1281_s10  ;;  %s461_s30 = scalar_lea.vmem %s1262_s2, %s1281_s10 }
  0x12   : > { %s1182_s16 = sadd.s32 %s1000_s14, %s999_s15  ;;  %979 = vmatprep.subr.bf16.mxu0 %v1041_v21  ;;  %v951_v34 = vld [vmem:[%s458_s27] ss:$0 sm:$0xff]  ;;  %s968_s14 = sshll.u32 %s1281_s10, 5 }
  0x13   : > { %s945_s17 = sshll.u32 %s1182_s16, 3  ;;  %980 = vmatpush3.bf16.msra.mxu0 %v1041_v21  ;;  %v952_v40 = vld [vmem:[%s461_s30] ss:$0 sm:$0xff]  ;;  %s474_s19 = scalar_lea.vmem %s1265_s5, %s968_s14 }
  0x14   : > { %s455_s20 = scalar_lea.vmem %s1260_s0, %s945_s17  ;;  %981 = vmatprep.subr.bf16.mxu0 %v1042_v22  ;;  %v1043_v48 = vld [vmem:[%s474_s19 + $0x18] sm:$0xff]   ;;  %v1044_v49 = vld [vmem:[%s474_s19 + $0x10] sm:$0xff]   ;;  %v1045_v50 = vld [vmem:[%s474_s19 + $0x8] sm:$0xff]   ;;  %s469_s22 = scalar_lea.vmem %s1264_s4, %s1281_s10 }
  0x15   : > { %v1190_v0 = vld [vmem:[%s455_s20] sm:$0xff]  ;;  %v1192_v1 = vld [vmem:[%s455_s20 + $0x10] sm:$0x1]  ;;  %v1194_v2 = vld [vmem:[%s455_s20 + $0x8] sm:$0xff]  ;;  %987 = vmatprep.subr.bf16.mxu1 %v1043_v48  ;;  %s477_s25 = scalar_lea.vmem %s1266_s6, %s1281_s10  ;;  %s492_s28 = scalar_lea.vmem %s1269_s9, %s945_s17 }
  0x16   : > { %v500_v3 = vsel %vm499_vm0, %v1190_v0, 0.0  ;;  %v507_v4 = vsel %vm506_vm1, %v1192_v1, 0.0  ;;  %v503_v5 = vsel %vm499_vm0, %v1194_v2, 0.0  ;;  %988 = vmatpush3.bf16.msra.mxu1 %v1043_v48  ;;  %v1046_v51 = vld [vmem:[%s474_s19] sm:$0xff]  }
  0x17   : > { %501 = vadd.xlane.f32.xlu0 %v500_v3  ;;  %508 = vadd.xlane.f32.xlu1 %v507_v4  ;;  %v953_v52 = vld [vmem:[%s469_s22] ss:$0 sm:$0xff] }
  0x18   : > { %982 = vmatpush3.bf16.msra.mxu0 %v1042_v22  ;;  %989 = vmatprep.subr.bf16.mxu1 %v1044_v49 }
  0x1a   : > { %990 = vmatpush3.bf16.msra.mxu1 %v1044_v49 }
  0x1b   : > { %504 = vadd.xlane.f32.xlu0 %v503_v5  ;;  %991 = vmatprep.subr.bf16.mxu1 %v1045_v50 }
  0x1e   : > { %992 = vmatpush3.bf16.msra.mxu1 %v1045_v50 }
  0x1f   : > { %993 = vmatprep.subr.bf16.mxu1 %v1046_v51 }
  0x22   : > { %994 = vmatpush3.bf16.msra.mxu1 %v1046_v51 }
  0xa0   : > { %v502_v6 = vpop.xlane.xlu0 %501  ;;  %v509_v7 = vpop.xlane.xlu1 %508 }
  0xa1   : > { %v511_v8 = vmul.f32 0.03125, %v502_v6  ;;  %v513_v9 = vmul.f32 0.03125, %v509_v7 }
  0xa3   : > { %v514_v10 = vsub.f32 %v1190_v0, %v511_v8  ;;  %v516_v11 = vsub.f32 %v1192_v1, %v513_v9 }
  0xa4   : > { %v505_v12 = vpop.xlane.xlu0 %504 }
  0xa5   : > { %v512_v13 = vmul.f32 0.03125, %v505_v12  ;;  %v517_v14 = vmul.f32 %v514_v10, %v514_v10  ;;  %v519_v15 = vmul.f32 %v516_v11, %v516_v11 }
  0xa7   : > { %v515_v16 = vsub.f32 %v1194_v2, %v512_v13  ;;  %v520_v17 = vsel %vm499_vm0, %v517_v14, 0.0  ;;  %v526_v18 = vsel %vm506_vm1, %v519_v15, 0.0 }
  0xa8   : > { %521 = vadd.xlane.f32.xlu1 %v520_v17 }
  0xa9   : > { %v518_v19 = vmul.f32 %v515_v16, %v515_v16 }
  0xab   : > { %v523_v20 = vsel %vm499_vm0, %v518_v19, 0.0 }
  0xac   : > { %527 = vadd.xlane.f32.xlu1 %v526_v18  ;;  %524 = vadd.xlane.f32.xlu0 %v523_v20 }
 0x131   : > { %v522_v23 = vpop.xlane.xlu1 %521 }
 0x132   : > { %v529_v24 = vmul.f32 0.03125, %v522_v23 }
 0x134   : > { %v532_v25 = vadd.f32 1e-06, %v529_v24 }
 0x135   : > { %v528_v26 = vpop.xlane.xlu1 %527  ;;  %v525_v27 = vpop.xlane.xlu0 %524 }
 0x136   : > { %1047 = vrsqrt.f32 %v532_v25  ;;  %v531_v28 = vmul.f32 0.03125, %v528_v26  ;;  %v530_v29 = vmul.f32 0.03125, %v525_v27 }
 0x138   : > { %v534_v30 = vadd.f32 1e-06, %v531_v28  ;;  %v533_v31 = vadd.f32 1e-06, %v530_v29  ;;  %v958_v28 = vld [vmem:[%s477_s25] ss:$0 sm:$0xff] }
 0x13a   : > { %1049 = vrsqrt.f32 %v534_v30 }
 0x13b   : > { %1051 = vrsqrt.f32 %v533_v31 }
 0x143   : > { %v1048_v32 = vpop.eup %1047 }
 0x144   : > { %v538_v33 = vmul.f32 %v1048_v32, %v514_v10 }
 0x146   : > { %v547_v39 = vmul.f32 %v951_v34, %v538_v33 }
 0x147   : > { %v1050_v35 = vpop.eup %1049 }
 0x148   : > { %v1052_v36 = vpop.eup %1051  ;;  %v540_v37 = vmul.f32 %v1050_v35, %v516_v11  ;;  %v556_v44 = vadd.f32 %v952_v40, %v547_v39 }
 0x149   : > { %v539_v38 = vmul.f32 %v1052_v36, %v515_v16 }
 0x14a   : > { %v549_v41 = vmul.f32 %v951_v34, %v540_v37 }
 0x14b   : > { %v548_v42 = vmul.f32 %v951_v34, %v539_v38 }
 0x14c   : > { %v558_v43 = vadd.f32 %v952_v40, %v549_v41 }
 0x14d   : > { %v557_v45 = vadd.f32 %v952_v40, %v548_v42 }
 0x14e   : > { %v560_v46 = vpack.c.bf16 %v558_v43, %v558_v43 }
 0x14f   : > { %v559_v47 = vpack.c.bf16 %v557_v45, %v556_v44 }
 0x151   : > { %983 = vmatprep.mubr.msk.bf16.mxu0 %vm499_vm0, %v559_v47 }
 0x152   : > { %984 = vmatmul.mubr.msk.bf16.vlgmr.msra.gmra.mxu0 %vm499_vm0, %v560_v46 }
 0x212   : > { %v985_v53 = vpop.f32.mrf.mxu0 }
 0x213   : > { %v633_v54 = vadd.f32 %v985_v53, %v953_v52 }
 0x214   : > { %v624_v55 = vpop.f32.mrf.mxu0 }
 0x215   : > { %v640_v56 = vmul.f32 %v633_v54, %v633_v54  ;;  %v625_v57 = vadd.f32 %v953_v52, %v624_v55 }
 0x216   : > { %v986_v58 = vpop.f32.mrf.mxu0 }
 0x217   : > { %v643_v59 = vmul.f32 %v640_v56, %v633_v54  ;;  %v638_v60 = vmul.f32 %v625_v57, %v625_v57 }
 0x218   : > { %v627_v61 = vpop.f32.mrf.mxu0 }
 0x219   : > { %v646_v62 = vmul.f32 0.044715, %v643_v59  ;;  %v641_v63 = vmul.f32 %v638_v60, %v625_v57  ;;  %v628_v3 = vadd.f32 %v953_v52, %v627_v61 }
 0x21b   : > { %v649_v4 = vadd.f32 %v646_v62, %v633_v54  ;;  %v644_v5 = vmul.f32 0.044715, %v641_v63  ;;  %v639_v6 = vmul.f32 %v628_v3, %v628_v3 }
 0x21d   : > { %v652_v7 = vmul.f32 0.7978846, %v649_v4  ;;  %v647_v8 = vadd.f32 %v644_v5, %v625_v57  ;;  %v642_v9 = vmul.f32 %v639_v6, %v628_v3 }
 0x21f   : > { %1053 = vtanh.f32 %v652_v7  ;;  %v650_v10 = vmul.f32 0.7978846, %v647_v8  ;;  %v645_v11 = vmul.f32 0.044715, %v642_v9 }
 0x221   : > { %v648_v12 = vadd.f32 %v645_v11, %v628_v3  ;;  %1055 = vtanh.f32 %v650_v10 }
 0x223   : > { %v651_v13 = vmul.f32 0.7978846, %v648_v12 }
 0x225   : > { %1057 = vtanh.f32 %v651_v13 }
 0x22c   : > { %v1054_v14 = vpop.eup %1053 }
 0x22d   : > { %v658_v16 = vadd.f32 1.0, %v1054_v14 }
 0x22e   : > { %v1056_v15 = vpop.eup %1055 }
 0x22f   : > { %v656_v17 = vadd.f32 1.0, %v1056_v15  ;;  %v661_v19 = vmul.f32 0.5, %v658_v16 }
 0x231   : > { %v659_v21 = vmul.f32 0.5, %v656_v17  ;;  %v664_v23 = vmul.f32 %v661_v19, %v633_v54 }
 0x232   : > { %v1058_v18 = vpop.eup %1057 }
 0x233   : > { %v657_v20 = vadd.f32 1.0, %v1058_v18  ;;  %v662_v24 = vmul.f32 %v659_v21, %v625_v57  ;;  %v666_v27 = vpack.c.bf16 %v664_v23, %v664_v23 }
 0x235   : > { %v660_v22 = vmul.f32 0.5, %v657_v20 }
 0x237   : > { %v663_v25 = vmul.f32 %v660_v22, %v628_v3 }
 0x239   : > { %v665_v26 = vpack.c.bf16 %v663_v25, %v662_v24 }
 0x23b   : > { %995 = vmatprep.mubr.msk.bf16.mxu1 %vm706_vm2, %v665_v26 }
 0x23c   : > { %996 = vmatmul.mubr.msk.bf16.vlgmr.msra.gmra.mxu1 %vm706_vm2, %v666_v27 }
 0x2fc   : > { %v997_v29 = vpop.f32.mrf.mxu1 }
 0x2fd   : > { %v756_v30 = vadd.f32 %v997_v29, %v958_v28 }
 0x2fe   : > { %v747_v31 = vpop.f32.mrf.mxu1 }
 0x2ff   : > { %v763_v32 = vadd.f32 %v756_v30, %v1192_v1  ;;  %v748_v33 = vadd.f32 %v958_v28, %v747_v31 }
 0x300   : > { %v998_v34 = vpop.f32.mrf.mxu1 }
 0x301   : > { %766 = vst.msk [vmem:[%s492_s28 + $0x10] sm:$0x1] %vm506_vm1, %v763_v32  ;;  %v761_v35 = vadd.f32 %v748_v33, %v1190_v0 }
 0x302   : > { %v750_v36 = vpop.f32.mrf.mxu1 }
 0x303   : > { %764 = vst.msk [vmem:[%s492_s28] sm:$0xff] %vm499_vm0, %v761_v35  ;;  %v751_v37 = vadd.f32 %v958_v28, %v750_v36 }
 0x305   : > { %v762_v38 = vadd.f32 %v751_v37, %v1194_v2 }
 0x307   : > { %765 = vst.msk [vmem:[%s492_s28 + $0x8] sm:$0xff] %vm499_vm0, %v762_v38 }
 0x308 PF: > { %s19_s13 = sadd.s32 1, %s1097_s13   ;;  %s1270_s30 = smov %s1089_s11 }
 0x309   : > { %p16_p7 = scmp.ge.s32.totalorder %s19_s13, 8   ;;  %s1271_s10 = smov %s1093_s12 }
 0x30a   : > { %s1272_s11 = smov %s1275_s7  ;;  %s1273_s12 = smov %s1279_s8 }
 0x30b   :  { %18 = sbr.rel (!%p16_p7) target bundleno = 3 (0x3), region = 110 }

// kernel: early_concat_forward.10
= control target key start
LH: loop header
LB: loop body
LE: loop exit
PB: predicated region body
PF: predicated region fallthrough
CT: control target
= control target key end

     0   :  { %s1216_s30 = smov 0   ;;  %s1218_s10 = smov 0   ;;  %s1341_s0 = inlined_call_operand.vmem [shape: f32[3,2,17,32], index: 0, kind: input, shape index: {}]   ;;  %s1342_s1 = inlined_call_operand.vmem [shape: f32[3,1,32], index: 1, kind: input, shape index: {}]   ;;  %s1343_s2 = inlined_call_operand.vmem [shape: f32[3,1,32], index: 2, kind: input, shape index: {}]   ;;  %s1344_s3 = inlined_call_operand.vmem [shape: bf16[3,32,64], index: 3, kind: input, shape index: {}]   ;;  %s1345_s4 = inlined_call_operand.vmem [shape: f32[3,1,64], index: 4, kind: input, shape index: {}]   ;;  %s1346_s5 = inlined_call_operand.vmem [shape: bf16[3,64,32], index: 5, kind: input, shape index: {}]   ;;  %s1347_s6 = inlined_call_operand.vmem [shape: f32[3,1,32], index: 6, kind: input, shape index: {}]   ;;  %s1348_s7 = inlined_call_operand.vmem [shape: f32[3,1,32], index: 7, kind: input, shape index: {}]   ;;  %s1349_s8 = inlined_call_operand.vmem [shape: f32[3,1,32], index: 8, kind: input, shape index: {}]   ;;  %s1350_s9 = inlined_call_operand.vmem [shape: f32[3,2,17,32], index: 9, kind: output, shape index: {}]  }
   0x1   :  { %s1220_s11 = smov 0   ;;  %s1222_s12 = smov 0  }
   0x2   :  { %s1224_s13 = smov 0  }
   0x3 LB: > { %s28_s14 = sadd.s32 1, %s1156_s11  ;;  %s31_s15 = sadd.s32 1, %s1160_s12  ;;  %s1164_s13 = sphi %s1224_s13, %s19_s13   ;;  %s1160_s12 = sphi %s1222_s12, %s1354_s12   ;;  %s1156_s11 = sphi %s1220_s11, %s1353_s11   ;;  %s1152_s10 = sphi %s1218_s10, %s1352_s10   ;;  %s1148_s30 = sphi %s1216_s30, %s1351_s30  }
   0x4   : > { %p29_p0 = scmp.ge.s32.totalorder %s28_s14, 2  ;;  %p1003_p1 = scmp.ge.s32.totalorder %s1164_s13, 1 }
   0x5   : > { %p375_p2 = scmp.lt.s32.totalorder %s1164_s13, 7 }
   0x6   : > { %s1356_s14 = smov (%p29_p0, %s28_s14), 0  ;;  %s1358_s15 = smov (!%p29_p0, %s31_s15), %s1160_s12 }
   0x7   : > { %p376_p3 = pnand %p1003_p1, %p375_p2  ;;  %p33_p4 = scmp.ge.s32.totalorder %s1358_s15, 3 }
   0x8   : > { %p447_p5 = scmp.lt.s32.totalorder (!%p376_p3), %s1152_s10, 2  ;;  %p449_p6 = scmp.lt.s32.totalorder (!%p376_p3), %s1148_s30, 1 }
   0x9   : > { %s1360_s15 = smov (%p33_p4, %s1358_s15), 0  ;;  %379 = sbr.rel (%p376_p3) target bundleno = 1085 (0x43d), region = 56 }
   0xe   : > { %s1362_s10 = smov (!%p447_p5, %s1152_s10), 2  ;;  %s1364_s30 = smov (!%p449_p6, %s1148_s30), 1  ;;  %vm499_vm0 = vcmask 261120   ;;  %vm506_vm1 = vcmask 253952   ;;  %vm706_vm2 = vcmask 523264  }
   0xf   : > { %s1061_s16 = smul.u32 6, %s1362_s10  ;;  %s1028_s23 = sshll.u32 %s1362_s10, 4 }
  0x10   : > { %s1060_s17 = smul.u32 3, %s1364_s30  ;;  %s466_s26 = scalar_lea.vmem %s1344_s3, %s1028_s23 }
  0x11   : > { %v1102_v21 = vld [vmem:[%s466_s26 + $0x8] sm:$0xff]   ;;  %v1103_v22 = vld [vmem:[%s466_s26] sm:$0xff]   ;;  %s458_s29 = scalar_lea.vmem %s1342_s1, %s1362_s10  ;;  %s1029_s20 = sshll.u32 %s1362_s10, 5 }
  0x12   : > { %s1249_s18 = sadd.s32 %s1061_s16, %s1060_s17  ;;  %1040 = vmatprep.subr.bf16.mxu0 %v1102_v21  ;;  %v1010_v34 = vld [vmem:[%s458_s29] ss:$0 sm:$0xff]  ;;  %s461_s17 = scalar_lea.vmem %s1343_s2, %s1362_s10 }
  0x13   : > { %s1004_s19 = sshll.u32 %s1249_s18, 3  ;;  %1041 = vmatpush3.bf16.msra.mxu0 %v1102_v21  ;;  %v1011_v40 = vld [vmem:[%s461_s17] ss:$0 sm:$0xff]  ;;  %s474_s23 = scalar_lea.vmem %s1346_s5, %s1029_s20 }
  0x14   : > { %s455_s22 = scalar_lea.vmem %s1341_s0, %s1004_s19  ;;  %1042 = vmatprep.subr.bf16.mxu0 %v1103_v22  ;;  %v1104_v48 = vld [vmem:[%s474_s23 + $0x18] sm:$0xff]   ;;  %v1105_v49 = vld [vmem:[%s474_s23 + $0x10] sm:$0xff]   ;;  %v1106_v50 = vld [vmem:[%s474_s23 + $0x8] sm:$0xff]   ;;  %s469_s26 = scalar_lea.vmem %s1345_s4, %s1362_s10 }
  0x15   : > { %v1257_v0 = vld [vmem:[%s455_s22] sm:$0xff]  ;;  %v1259_v1 = vld [vmem:[%s455_s22 + $0x10] sm:$0x1]  ;;  %v1261_v2 = vld [vmem:[%s455_s22 + $0x8] sm:$0xff]  ;;  %1048 = vmatprep.subr.bf16.mxu1 %v1104_v48  ;;  %s477_s29 = scalar_lea.vmem %s1347_s6, %s1362_s10  ;;  %s480_s17 = scalar_lea.vmem %s1348_s7, %s1362_s10 }
  0x16   : > { %v500_v3 = vsel %vm499_vm0, %v1257_v0, 0.0  ;;  %v507_v4 = vsel %vm506_vm1, %v1259_v1, 0.0  ;;  %v503_v5 = vsel %vm499_vm0, %v1261_v2, 0.0  ;;  %1049 = vmatpush3.bf16.msra.mxu1 %v1104_v48  ;;  %v1107_v51 = vld [vmem:[%s474_s23] sm:$0xff]   ;;  %s483_s22 = scalar_lea.vmem %s1349_s8, %s1362_s10  ;;  %s492_s25 = scalar_lea.vmem %s1350_s9, %s1004_s19 }
  0x17   : > { %501 = vadd.xlane.f32.xlu0 %v500_v3  ;;  %508 = vadd.xlane.f32.xlu1 %v507_v4  ;;  %v1012_v52 = vld [vmem:[%s469_s26] ss:$0 sm:$0xff] }
  0x18   : > { %1043 = vmatpush3.bf16.msra.mxu0 %v1103_v22  ;;  %1050 = vmatprep.subr.bf16.mxu1 %v1105_v49 }
  0x1a   : > { %1051 = vmatpush3.bf16.msra.mxu1 %v1105_v49 }
  0x1b   : > { %504 = vadd.xlane.f32.xlu0 %v503_v5  ;;  %1052 = vmatprep.subr.bf16.mxu1 %v1106_v50 }
  0x1e   : > { %1053 = vmatpush3.bf16.msra.mxu1 %v1106_v50 }
  0x1f   : > { %1054 = vmatprep.subr.bf16.mxu1 %v1107_v51 }
  0x22   : > { %1055 = vmatpush3.bf16.msra.mxu1 %v1107_v51 }
  0xa0   : > { %v502_v6 = vpop.xlane.xlu0 %501  ;;  %v509_v7 = vpop.xlane.xlu1 %508 }
  0xa1   : > { %v511_v8 = vmul.f32 0.03125, %v502_v6  ;;  %v513_v9 = vmul.f32 0.03125, %v509_v7 }
  0xa3   : > { %v514_v10 = vsub.f32 %v1257_v0, %v511_v8  ;;  %v516_v11 = vsub.f32 %v1259_v1, %v513_v9 }
  0xa4   : > { %v505_v12 = vpop.xlane.xlu0 %504 }
  0xa5   : > { %v512_v13 = vmul.f32 0.03125, %v505_v12  ;;  %v517_v14 = vmul.f32 %v514_v10, %v514_v10  ;;  %v519_v15 = vmul.f32 %v516_v11, %v516_v11 }
  0xa7   : > { %v515_v16 = vsub.f32 %v1261_v2, %v512_v13  ;;  %v520_v17 = vsel %vm499_vm0, %v517_v14, 0.0  ;;  %v526_v18 = vsel %vm506_vm1, %v519_v15, 0.0 }
  0xa8   : > { %521 = vadd.xlane.f32.xlu1 %v520_v17 }
  0xa9   : > { %v518_v19 = vmul.f32 %v515_v16, %v515_v16 }
  0xab   : > { %v523_v20 = vsel %vm499_vm0, %v518_v19, 0.0 }
  0xac   : > { %527 = vadd.xlane.f32.xlu1 %v526_v18  ;;  %524 = vadd.xlane.f32.xlu0 %v523_v20 }
 0x131   : > { %v522_v23 = vpop.xlane.xlu1 %521 }
 0x132   : > { %v529_v24 = vmul.f32 0.03125, %v522_v23 }
 0x134   : > { %v532_v25 = vadd.f32 1e-06, %v529_v24 }
 0x135   : > { %v528_v26 = vpop.xlane.xlu1 %527  ;;  %v525_v27 = vpop.xlane.xlu0 %524 }
 0x136   : > { %1108 = vrsqrt.f32 %v532_v25  ;;  %v531_v28 = vmul.f32 0.03125, %v528_v26  ;;  %v530_v29 = vmul.f32 0.03125, %v525_v27 }
 0x138   : > { %v534_v30 = vadd.f32 1e-06, %v531_v28  ;;  %v533_v31 = vadd.f32 1e-06, %v530_v29  ;;  %v1017_v29 = vld [vmem:[%s477_s29] ss:$0 sm:$0xff] }
 0x13a   : > { %1110 = vrsqrt.f32 %v534_v30 }
 0x13b   : > { %1112 = vrsqrt.f32 %v533_v31 }
 0x143   : > { %v1109_v32 = vpop.eup %1108 }
 0x144   : > { %v538_v33 = vmul.f32 %v1109_v32, %v514_v10 }
 0x146   : > { %v547_v39 = vmul.f32 %v1010_v34, %v538_v33 }
 0x147   : > { %v1111_v35 = vpop.eup %1110 }
 0x148   : > { %v1113_v36 = vpop.eup %1112  ;;  %v540_v37 = vmul.f32 %v1111_v35, %v516_v11  ;;  %v556_v44 = vadd.f32 %v1011_v40, %v547_v39 }
 0x149   : > { %v539_v38 = vmul.f32 %v1113_v36, %v515_v16 }
 0x14a   : > { %v549_v41 = vmul.f32 %v1010_v34, %v540_v37 }
 0x14b   : > { %v548_v42 = vmul.f32 %v1010_v34, %v539_v38 }
 0x14c   : > { %v558_v43 = vadd.f32 %v1011_v40, %v549_v41 }
 0x14d   : > { %v557_v45 = vadd.f32 %v1011_v40, %v548_v42 }
 0x14e   : > { %v560_v46 = vpack.c.bf16 %v558_v43, %v558_v43 }
 0x14f   : > { %v559_v47 = vpack.c.bf16 %v557_v45, %v556_v44 }
 0x151   : > { %1044 = vmatprep.mubr.msk.bf16.mxu0 %vm499_vm0, %v559_v47 }
 0x152   : > { %1045 = vmatmul.mubr.msk.bf16.vlgmr.msra.gmra.mxu0 %vm499_vm0, %v560_v46 }
 0x212   : > { %v1046_v53 = vpop.f32.mrf.mxu0 }
 0x213   : > { %v633_v54 = vadd.f32 %v1046_v53, %v1012_v52 }
 0x214   : > { %v624_v55 = vpop.f32.mrf.mxu0 }
 0x215   : > { %v640_v56 = vmul.f32 %v633_v54, %v633_v54  ;;  %v625_v57 = vadd.f32 %v1012_v52, %v624_v55 }
 0x216   : > { %v1047_v58 = vpop.f32.mrf.mxu0 }
 0x217   : > { %v643_v59 = vmul.f32 %v640_v56, %v633_v54  ;;  %v638_v60 = vmul.f32 %v625_v57, %v625_v57 }
 0x218   : > { %v627_v61 = vpop.f32.mrf.mxu0 }
 0x219   : > { %v646_v62 = vmul.f32 0.044715, %v643_v59  ;;  %v641_v63 = vmul.f32 %v638_v60, %v625_v57  ;;  %v628_v3 = vadd.f32 %v1012_v52, %v627_v61 }
 0x21b   : > { %v649_v4 = vadd.f32 %v646_v62, %v633_v54  ;;  %v644_v5 = vmul.f32 0.044715, %v641_v63  ;;  %v639_v6 = vmul.f32 %v628_v3, %v628_v3 }
 0x21d   : > { %v652_v7 = vmul.f32 0.7978846, %v649_v4  ;;  %v647_v8 = vadd.f32 %v644_v5, %v625_v57  ;;  %v642_v9 = vmul.f32 %v639_v6, %v628_v3  ;;  %v1025_v5 = vld [vmem:[%s483_s22] ss:$0 sm:$0xff] }
 0x21f   : > { %1114 = vtanh.f32 %v652_v7  ;;  %v650_v10 = vmul.f32 0.7978846, %v647_v8  ;;  %v645_v11 = vmul.f32 0.044715, %v642_v9 }
 0x221   : > { %v648_v12 = vadd.f32 %v645_v11, %v628_v3  ;;  %1116 = vtanh.f32 %v650_v10 }
 0x223   : > { %v651_v13 = vmul.f32 0.7978846, %v648_v12 }
 0x225   : > { %1118 = vtanh.f32 %v651_v13 }
 0x22c   : > { %v1115_v14 = vpop.eup %1114 }
 0x22d   : > { %v658_v16 = vadd.f32 1.0, %v1115_v14 }
 0x22e   : > { %v1117_v15 = vpop.eup %1116 }
 0x22f   : > { %v656_v17 = vadd.f32 1.0, %v1117_v15  ;;  %v661_v19 = vmul.f32 0.5, %v658_v16 }
 0x231   : > { %v659_v21 = vmul.f32 0.5, %v656_v17  ;;  %v664_v23 = vmul.f32 %v661_v19, %v633_v54 }
 0x232   : > { %v1119_v18 = vpop.eup %1118 }
 0x233   : > { %v657_v20 = vadd.f32 1.0, %v1119_v18  ;;  %v662_v24 = vmul.f32 %v659_v21, %v625_v57  ;;  %v666_v27 = vpack.c.bf16 %v664_v23, %v664_v23 }
 0x235   : > { %v660_v22 = vmul.f32 0.5, %v657_v20 }
 0x237   : > { %v663_v25 = vmul.f32 %v660_v22, %v628_v3  ;;  %v1024_v3 = vld [vmem:[%s480_s17] ss:$0 sm:$0xff] }
 0x239   : > { %v665_v26 = vpack.c.bf16 %v663_v25, %v662_v24 }
 0x23b   : > { %1056 = vmatprep.mubr.msk.bf16.mxu1 %vm706_vm2, %v665_v26 }
 0x23c   : > { %1057 = vmatmul.mubr.msk.bf16.vlgmr.msra.gmra.mxu1 %vm706_vm2, %v666_v27 }
 0x2fc   : > { %v1058_v28 = vpop.f32.mrf.mxu1 }
 0x2fd   : > { %v756_v31 = vadd.f32 %v1058_v28, %v1017_v29 }
 0x2fe   : > { %v747_v30 = vpop.f32.mrf.mxu1 }
 0x2ff   : > { %v748_v32 = vadd.f32 %v1017_v29, %v747_v30  ;;  %v763_v38 = vadd.f32 %v756_v31, %v1259_v1 }
 0x300   : > { %v1059_v33 = vpop.f32.mrf.mxu1 }
 0x301   : > { %v761_v34 = vadd.f32 %v748_v32, %v1257_v0  ;;  %v772_v41 = vsel %vm506_vm1, %v763_v38, 0.0 }
 0x302   : > { %v750_v35 = vpop.f32.mrf.mxu1 }
 0x303   : > { %v751_v36 = vadd.f32 %v1017_v29, %v750_v35  ;;  %v766_v37 = vsel %vm499_vm0, %v761_v34, 0.0 }
 0x304   : > { %767 = vadd.xlane.f32.xlu0 %v766_v37 }
 0x305   : > { %v762_v39 = vadd.f32 %v751_v36, %v1261_v2 }
 0x307   : > { %v769_v40 = vsel %vm499_vm0, %v762_v39, 0.0 }
 0x308   : > { %770 = vadd.xlane.f32.xlu1 %v769_v40  ;;  %773 = vadd.xlane.f32.xlu0 %v772_v41 }
 0x38d   : > { %v768_v42 = vpop.xlane.xlu0 %767 }
 0x38e   : > { %v775_v43 = vmul.f32 0.03125, %v768_v42 }
 0x390   : > { %v778_v44 = vsub.f32 %v761_v34, %v775_v43 }
 0x391   : > { %v771_v45 = vpop.xlane.xlu1 %770  ;;  %v774_v0 = vpop.xlane.xlu0 %773 }
 0x392   : > { %v776_v46 = vmul.f32 0.03125, %v771_v45  ;;  %v777_v47 = vmul.f32 0.03125, %v774_v0  ;;  %v781_v48 = vmul.f32 %v778_v44, %v778_v44 }
 0x394   : > { %v779_v49 = vsub.f32 %v762_v39, %v776_v46  ;;  %v780_v50 = vsub.f32 %v763_v38, %v777_v47  ;;  %v784_v1 = vsel %vm499_vm0, %v781_v48, 0.0 }
 0x395   : > { %785 = vadd.xlane.f32.xlu1 %v784_v1 }
 0x396   : > { %v782_v2 = vmul.f32 %v779_v49, %v779_v49  ;;  %v783_v51 = vmul.f32 %v780_v50, %v780_v50 }
 0x398   : > { %v787_v52 = vsel %vm499_vm0, %v782_v2, 0.0  ;;  %v790_v53 = vsel %vm506_vm1, %v783_v51, 0.0 }
 0x399   : > { %788 = vadd.xlane.f32.xlu0 %v787_v52  ;;  %791 = vadd.xlane.f32.xlu1 %v790_v53 }
 0x41e   : > { %v786_v54 = vpop.xlane.xlu1 %785 }
 0x41f   : > { %v793_v55 = vmul.f32 0.03125, %v786_v54 }
 0x421   : > { %v796_v56 = vadd.f32 1e-06, %v793_v55 }
 0x422   : > { %v792_v57 = vpop.xlane.xlu1 %791  ;;  %v789_v58 = vpop.xlane.xlu0 %788 }
 0x423   : > { %1120 = vrsqrt.f32 %v796_v56  ;;  %v795_v59 = vmul.f32 0.03125, %v792_v57  ;;  %v794_v60 = vmul.f32 0.03125, %v789_v58 }
 0x425   : > { %v798_v61 = vadd.f32 1e-06, %v795_v59  ;;  %v797_v62 = vadd.f32 1e-06, %v794_v60 }
 0x427   : > { %1122 = vrsqrt.f32 %v798_v61 }
 0x428   : > { %1124 = vrsqrt.f32 %v797_v62 }
 0x430   : > { %v1121_v63 = vpop.eup %1120 }
 0x431   : > { %v802_v4 = vmul.f32 %v1121_v63, %v778_v44 }
 0x433   : > { %v811_v6 = vmul.f32 %v1024_v3, %v802_v4 }
 0x434   : > { %v1123_v7 = vpop.eup %1122 }
 0x435   : > { %v1125_v8 = vpop.eup %1124  ;;  %v820_v9 = vadd.f32 %v1025_v5, %v811_v6  ;;  %v804_v10 = vmul.f32 %v1123_v7, %v780_v50 }
 0x436   : > { %v803_v11 = vmul.f32 %v1125_v8, %v779_v49 }
 0x437   : > { %823 = vst.msk [vmem:[%s492_s25] sm:$0xff] %vm499_vm0, %v820_v9  ;;  %v813_v12 = vmul.f32 %v1024_v3, %v804_v10 }
 0x438   : > { %v812_v13 = vmul.f32 %v1024_v3, %v803_v11 }
 0x439   : > { %v822_v14 = vadd.f32 %v1025_v5, %v813_v12 }
 0x43a   : > { %v821_v15 = vadd.f32 %v1025_v5, %v812_v13 }
 0x43b   : > { %825 = vst.msk [vmem:[%s492_s25 + $0x10] sm:$0x1] %vm506_vm1, %v822_v14 }
 0x43c   : > { %824 = vst.msk [vmem:[%s492_s25 + $0x8] sm:$0xff] %vm499_vm0, %v821_v15 }
 0x43d PF: > { %s19_s13 = sadd.s32 1, %s1164_s13   ;;  %s1351_s30 = smov %s1156_s11 }
 0x43e   : > { %p16_p7 = scmp.ge.s32.totalorder %s19_s13, 8   ;;  %s1352_s10 = smov %s1160_s12 }
 0x43f   : > { %s1353_s11 = smov %s1356_s14  ;;  %s1354_s12 = smov %s1360_s15 }
 0x440   :  { %18 = sbr.rel (!%p16_p7) target bundleno = 3 (0x3), region = 110 }

// kernel: early_concat_forward.7
= control target key start
LH: loop header
LB: loop body
LE: loop exit
PB: predicated region body
PF: predicated region fallthrough
CT: control target
= control target key end

     0   :  { %s1953_s24 = smov 0   ;;  %s1955_s25 = smov 0   ;;  %s2155_s0 = inlined_call_operand.vmem [shape: f32[3,2,17,32], index: 0, kind: input, shape index: {}]   ;;  %s2156_s1 = inlined_call_operand.vmem [shape: f32[3,1,32], index: 1, kind: input, shape index: {}]   ;;  %s2157_s2 = inlined_call_operand.vmem [shape: f32[3,1,32], index: 2, kind: input, shape index: {}]   ;;  %s2158_s3 = inlined_call_operand.vmem [shape: bf16[3,6,32,16], index: 3, kind: input, shape index: {}]   ;;  %s2159_s4 = inlined_call_operand.vmem [shape: f32[3,6,1,16], index: 4, kind: input, shape index: {}]   ;;  %s2160_s5 = inlined_call_operand.vmem [shape: bf16[3,2,16,32], index: 5, kind: input, shape index: {}]   ;;  %s2161_s6 = inlined_call_operand.vmem [shape: f32[3,1,32], index: 6, kind: input, shape index: {}]   ;;  %s2162_s7 = inlined_call_operand.vmem [shape: f32[3,2,17,32], index: 7, kind: output, shape index: {}]  }
   0x1   :  { %s1957_s26 = smov 0   ;;  %s1959_s27 = smov 0  }
   0x2   :  { %s1961_s28 = smov 0  }
   0x3 LB: > { %s26_s29 = sadd.s32 1, %s1902_s26  ;;  %s29_s30 = sadd.s32 1, %s1906_s27  ;;  %s1910_s28 = sphi %s1961_s28, %s17_s28   ;;  %s1906_s27 = sphi %s1959_s27, %s2166_s27   ;;  %s1902_s26 = sphi %s1957_s26, %s2165_s26   ;;  %s1898_s25 = sphi %s1955_s25, %s2164_s25   ;;  %s1894_s24 = sphi %s1953_s24, %s2163_s24  }
   0x4   : > { %p27_p0 = scmp.ge.s32.totalorder %s26_s29, 2  ;;  %p1559_p1 = scmp.ge.s32.totalorder %s1910_s28, 1 }
   0x5   : > { %p310_p2 = scmp.lt.s32.totalorder %s1910_s28, 7 }
   0x6   : > { %s2168_s29 = smov (%p27_p0, %s26_s29), 0  ;;  %s2170_s30 = smov (!%p27_p0, %s29_s30), %s1906_s27 }
   0x7   : > { %p311_p3 = pnand %p1559_p1, %p310_p2  ;;  %p31_p4 = scmp.ge.s32.totalorder %s2170_s30, 3 }
   0x8   : > { %p373_p5 = scmp.lt.s32.totalorder (!%p311_p3), %s1898_s25, 2  ;;  %p375_p6 = scmp.lt.s32.totalorder (!%p311_p3), %s1894_s24, 1 }
   0x9   : > { %s2172_s30 = smov (%p31_p4, %s2170_s30), 0  ;;  %314 = sbr.rel (%p311_p3) target bundleno = 2205 (0x89d), region = 48 }
   0xe   : > { %s2174_s25 = smov (!%p373_p5, %s1898_s25), 2  ;;  %s2176_s24 = smov (!%p375_p6, %s1894_s24), 1  ;;  %vm420_vm0 = vcmask 261120   ;;  %vm427_vm1 = vcmask 253952   ;;  %vm709_vm2 = vcmask 130048   ;;  %vm818_vm3 = vcmask 1040384  }
   0xf   : > { %s1785_s8 = smul.u32 6, %s2174_s25  ;;  %s384_s21 = scalar_lea.vmem %s2156_s1, %s2174_s25  ;;  %vm773_vm4 = vcmask 138240   ;;  %vm780_vm5 = vcmask 131072  }
  0x10   : > { %s1784_s9 = smul.u32 3, %s2176_s24  ;;  %v1565_v37 = vld [vmem:[%s384_s21] ss:$0 sm:$0xff]  ;;  %s387_s24 = scalar_lea.vmem %s2157_s2, %s2174_s25 }
  0x11   : > { %s1786_s10 = smul.u32 96, %s2174_s25  ;;  %v1566_v44 = vld [vmem:[%s387_s24] ss:$0 sm:$0xff]  ;;  %s2055_s13 = scalar_lea.vmem %s2159_s4, %s1785_s8 }
  0x12   : > { %s1989_s11 = sadd.s32 %s1785_s8, %s1784_s9  ;;  %v1577_v52 = vld [vmem:[%s2055_s13 + $0x2] ss:$0 sm:$0xff]  ;;  %v1567_v62 = vld [vmem:[%s2055_s13] ss:$0 sm:$0xff]  ;;  %s1641_s8 = sshll.u32 %s2174_s25, 4 }
  0x13   : > { %s1560_s12 = sshll.u32 %s1989_s11, 3  ;;  %s1995_s15 = scalar_lea.vmem %s2158_s3, %s1786_s10 }
  0x14   : > { %s381_s18 = scalar_lea.vmem %s2155_s0, %s1560_s12  ;;  %v1828_v21 = vld [vmem:[%s1995_s15 + $0x8] sm:$0xff]   ;;  %v1830_v23 = vld [vmem:[%s1995_s15] sm:$0xff]   ;;  %s2104_s17 = scalar_lea.vmem %s2160_s5, %s1641_s8 }
  0x15   : > { %v2002_v0 = vld [vmem:[%s381_s18] sm:$0xff]  ;;  %v2004_v1 = vld [vmem:[%s381_s18 + $0x10] sm:$0x1]  ;;  %v2006_v2 = vld [vmem:[%s381_s18 + $0x8] sm:$0xff]  ;;  %1688 = vmatprep.subr.bf16.mxu0 %v1828_v21  ;;  %s404_s19 = scalar_lea.vmem %s2161_s6, %s2174_s25  ;;  %s413_s22 = scalar_lea.vmem %s2162_s7, %s1560_s12 }
  0x16   : > { %v421_v3 = vsel %vm420_vm0, %v2002_v0, 0.0  ;;  %v428_v4 = vsel %vm427_vm1, %v2004_v1, 0.0  ;;  %v424_v5 = vsel %vm420_vm0, %v2006_v2, 0.0  ;;  %v1829_v22 = vld [vmem:[%s1995_s15 + $0x28] sm:$0xff]   ;;  %1689 = vmatpush3.bf16.msra.mxu0 %v1828_v21  ;;  %v1831_v24 = vld [vmem:[%s1995_s15 + $0x20] sm:$0xff]  }
  0x17   : > { %422 = vadd.xlane.f32.xlu0 %v421_v3  ;;  %429 = vadd.xlane.f32.xlu1 %v428_v4  ;;  %v1832_v25 = vld [vmem:[%s1995_s15 + $0x48] sm:$0xff]   ;;  %v1833_v51 = vld [vmem:[%s1995_s15 + $0x40] sm:$0xff]  }
  0x18   : > { %1696 = vmatprep.subr.bf16.mxu1 %v1829_v22  ;;  %1690 = vmatprep.subr.bf16.mxu0 %v1830_v23  ;;  %v1587_v4 = vld [vmem:[%s2055_s13 + $0x4] ss:$0 sm:$0xff] }
  0x19   : > { %1697 = vmatpush3.bf16.msra.mxu1 %v1829_v22 }
  0x1a   : > { %1698 = vmatprep.subr.bf16.mxu1 %v1831_v24  ;;  %1691 = vmatpush3.bf16.msra.mxu0 %v1830_v23 }
  0x1b   : > { %425 = vadd.xlane.f32.xlu0 %v424_v5  ;;  %1704 = vmatprep.subr.bf16.mxu0 %v1832_v25 }
  0x1d   : > { %1699 = vmatpush3.bf16.msra.mxu1 %v1831_v24 }
  0xa0   : > { %v423_v6 = vpop.xlane.xlu0 %422  ;;  %v430_v7 = vpop.xlane.xlu1 %429 }
  0xa1   : > { %v432_v8 = vmul.f32 0.03125, %v423_v6  ;;  %v434_v9 = vmul.f32 0.03125, %v430_v7 }
  0xa3   : > { %v435_v10 = vsub.f32 %v2002_v0, %v432_v8  ;;  %v437_v11 = vsub.f32 %v2004_v1, %v434_v9 }
  0xa4   : > { %v426_v12 = vpop.xlane.xlu0 %425 }
  0xa5   : > { %v433_v13 = vmul.f32 0.03125, %v426_v12  ;;  %v438_v14 = vmul.f32 %v435_v10, %v435_v10  ;;  %v440_v15 = vmul.f32 %v437_v11, %v437_v11 }
  0xa7   : > { %v436_v16 = vsub.f32 %v2006_v2, %v433_v13  ;;  %v441_v17 = vsel %vm420_vm0, %v438_v14, 0.0  ;;  %v447_v18 = vsel %vm427_vm1, %v440_v15, 0.0  ;;  %v1912_v13 = vmov 0  }
  0xa8   : > { %442 = vadd.xlane.f32.xlu1 %v441_v17  ;;  %v2062_v14 = vsel %vm818_vm3, 65535, %v1912_v13  ;;  %v1834_v17 = vld [vmem:[%s1995_s15 + $0x38] sm:$0xff]  }
  0xa9   : > { %v439_v19 = vmul.f32 %v436_v16, %v436_v16 }
  0xab   : > { %v444_v20 = vsel %vm420_vm0, %v439_v19, 0.0 }
  0xac   : > { %448 = vadd.xlane.f32.xlu1 %v447_v18  ;;  %445 = vadd.xlane.f32.xlu0 %v444_v20 }
 0x131   : > { %v443_v26 = vpop.xlane.xlu1 %442 }
 0x132   : > { %v450_v27 = vmul.f32 0.03125, %v443_v26 }
 0x134   : > { %v453_v28 = vadd.f32 1e-06, %v450_v27  ;;  %v1835_v27 = vld [vmem:[%s1995_s15 + $0x30] sm:$0xff]  }
 0x135   : > { %v449_v29 = vpop.xlane.xlu1 %448  ;;  %v446_v30 = vpop.xlane.xlu0 %445 }
 0x136   : > { %1842 = vrsqrt.f32 %v453_v28  ;;  %v452_v31 = vmul.f32 0.03125, %v449_v29  ;;  %v451_v32 = vmul.f32 0.03125, %v446_v30 }
 0x138   : > { %v455_v33 = vadd.f32 1e-06, %v452_v31  ;;  %v454_v34 = vadd.f32 1e-06, %v451_v32 }
 0x13a   : > { %1844 = vrsqrt.f32 %v455_v33 }
 0x13b   : > { %1846 = vrsqrt.f32 %v454_v34 }
 0x143   : > { %v1843_v35 = vpop.eup %1842 }
 0x144   : > { %v459_v36 = vmul.f32 %v1843_v35, %v435_v10  ;;  %v1611_v35 = vld [vmem:[%s2055_s13 + $0x3] ss:$0 sm:$0xff] }
 0x146   : > { %v468_v41 = vmul.f32 %v1565_v37, %v459_v36 }
 0x147   : > { %v1845_v38 = vpop.eup %1844 }
 0x148   : > { %v1847_v39 = vpop.eup %1846  ;;  %v461_v40 = vmul.f32 %v1845_v38, %v437_v11  ;;  %v477_v47 = vadd.f32 %v1566_v44, %v468_v41 }
 0x149   : > { %v460_v42 = vmul.f32 %v1847_v39, %v436_v16 }
 0x14a   : > { %v470_v43 = vmul.f32 %v1565_v37, %v461_v40 }
 0x14b   : > { %v469_v45 = vmul.f32 %v1565_v37, %v460_v42 }
 0x14c   : > { %v479_v46 = vadd.f32 %v1566_v44, %v470_v43 }
 0x14d   : > { %v478_v48 = vadd.f32 %v1566_v44, %v469_v45 }
 0x14e   : > { %v2033_v49 = vpack.c.bf16 %v479_v46, %v479_v46 }
 0x14f   : > { %v2035_v50 = vpack.c.bf16 %v478_v48, %v477_v47 }
 0x151   : > { %1692 = vmatprep.mubr.msk.bf16.mxu0 %vm420_vm0, %v2035_v50  ;;  %1700 = vmatprep.mubr.msk.bf16.mxu1 %vm420_vm0, %v2035_v50 }
 0x152   : > { %1693 = vmatmul.mubr.msk.bf16.vlgmr.msra.gmra.mxu0 %vm420_vm0, %v2033_v49  ;;  %1701 = vmatmul.mubr.msk.bf16.vlgmr.msra.gmra.mxu1 %vm420_vm0, %v2033_v49 }
 0x153   : > { %1705 = vmatpush3.bf16.msra.mxu0 %v1832_v25  ;;  %1708 = vmatprep.mubr.msk.bf16.mxu0 %vm420_vm0, %v2035_v50 }
 0x154   : > { %1706 = vmatprep.subr.bf16.mxu0 %v1833_v51 }
 0x157   : > { %1707 = vmatpush3.bf16.msra.mxu0 %v1833_v51 }
 0x15a   : > { %1709 = vmatmul.mubr.msk.bf16.vlgmr.msra.gmra.mxu0 %vm420_vm0, %v2033_v49 }
 0x212   : > { %v1694_v53 = vpop.f32.mrf.mxu0  ;;  %v1702_v54 = vpop.f32.mrf.mxu1 }
 0x213   : > { %v627_v55 = vadd.f32 %v1702_v54, %v1577_v52  ;;  %v554_v22 = vadd.f32 %v1694_v53, %v1567_v62 }
 0x214   : > { %v545_v56 = vpop.f32.mrf.mxu0  ;;  %v618_v57 = vpop.f32.mrf.mxu1 }
 0x215   : > { %v708_v58 = vpack.c.bf16 %v627_v55, %v627_v55  ;;  %v546_v5 = vadd.f32 %v1567_v62, %v545_v56  ;;  %v619_v6 = vadd.f32 %v1577_v52, %v618_v57  ;;  %v706_v26 = vpack.c.bf16 %v554_v22, %v554_v22  ;;  %v1840_v22 = vld [vmem:[%s2104_s17] sm:$0xff]  }
 0x216   : > { %v1695_v59 = vpop.f32.mrf.mxu0  ;;  %v1703_v60 = vpop.f32.mrf.mxu1 }
 0x217   : > { %v720_v61 = vsel %vm709_vm2, %v708_v58, 0  ;;  %1780 = vmatprep.subr.msk.bf16.mxu1 %vm709_vm2, %v708_v58 }
 0x218   : > { %v548_v63 = vpop.f32.mrf.mxu0  ;;  %v621_v3 = vpop.f32.mrf.mxu1  ;;  %1713 = vmatpush3.bf16.xpose.msra.mxu1 %v720_v61 }
 0x219   : > { %v549_v7 = vadd.f32 %v1567_v62, %v548_v63  ;;  %v622_v8 = vadd.f32 %v1577_v52, %v621_v3 }
 0x21a   : > { %v1710_v9 = vpop.f32.mrf.mxu0 }
 0x21b   : > { %v705_v10 = vpack.c.bf16 %v549_v7, %v546_v5  ;;  %v707_v11 = vpack.c.bf16 %v622_v8, %v619_v6  ;;  %v700_v12 = vadd.f32 %v1710_v9, %v1587_v4  ;;  %v1836_v6 = vld [vmem:[%s1995_s15 + $0x18] sm:$0xff]  }
 0x21c   : > { %v691_v15 = vpop.f32.mrf.mxu0 }
 0x21d   : > { %v811_v16 = vpack.c.bf16 %v700_v12, %v700_v12  ;;  %1781 = vmatprep.subr.msk.bf16.mxu1 %vm709_vm2, %v707_v11  ;;  %1716 = vmatprep.mubr.msk.bf16.mxu1 %vm709_vm2, %v705_v10  ;;  %v717_v20 = vsel %vm709_vm2, %v707_v11, 0  ;;  %v692_v23 = vadd.f32 %v1587_v4, %v691_v15 }
 0x21e   : > { %v1711_v18 = vpop.f32.mrf.mxu0 }
 0x21f   : > { %v822_v19 = vand.u32 %v2062_v14, %v811_v16 }
 0x220   : > { %v694_v21 = vpop.f32.mrf.mxu0  ;;  %1715 = vmatpush3.bf16.xpose.msra.mxu1 %v717_v20  ;;  %v1838_v20 = vld [vmem:[%s1995_s15 + $0x58] sm:$0xff]  }
 0x221   : > { %v695_v24 = vadd.f32 %v1587_v4, %v694_v21  ;;  %1720 = vmatprep.subr.bf16.mxu0 %v822_v19  ;;  %1736 = vmatprep.subr.bf16.mxu1 %v1834_v17  ;;  %v1839_v21 = vld [vmem:[%s1995_s15 + $0x50] sm:$0xff]  }
 0x222   : > { %1721 = vmatpush3.bf16.msra.mxu0 %v822_v19  ;;  %v1837_v19 = vld [vmem:[%s1995_s15 + $0x10] sm:$0xff]  }
 0x223   : > { %v810_v25 = vpack.c.bf16 %v695_v24, %v692_v23 }
 0x225   : > { %1722 = vmatprep.subr.bf16.mxu0 %v810_v25 }
 0x226   : > { %1723 = vmatpush3.bf16.msra.mxu0 %v810_v25 }
 0x227   : > { %1717 = vmatmul.mubr.msk.bf16.vlgmr.msra.gmra.mxu1 %vm709_vm2, %v706_v26  ;;  %1728 = vmatprep.subr.bf16.mxu0 %v1836_v6 }
 0x228   : > { %1737 = vmatpush3.bf16.msra.mxu1 %v1834_v17  ;;  %1740 = vmatprep.mubr.msk.bf16.mxu1 %vm420_vm0, %v2035_v50 }
 0x229   : > { %1738 = vmatprep.subr.bf16.mxu1 %v1835_v27 }
 0x22c   : > { %1739 = vmatpush3.bf16.msra.mxu1 %v1835_v27 }
 0x22f   : > { %1741 = vmatmul.mubr.msk.bf16.vlgmr.msra.gmra.mxu1 %vm420_vm0, %v2033_v49 }
 0x2e7   : > { %v1718_v28 = vpop.f32.mrf.mxu1 }
 0x2e8   : > { %v772_v32 = vmul.f32 0.25, %v1718_v28  ;;  %v1601_v28 = vld [vmem:[%s2055_s13 + $0x1] ss:$0 sm:$0xff] }
 0x2e9   : > { %v756_v29 = vpop.f32.mrf.mxu1 }
 0x2ea   : > { %v770_v30 = vmul.f32 0.25, %v756_v29  ;;  %v781_v39 = vsel %vm780_vm5, %v772_v32, -inf }
 0x2eb   : > { %v1719_v31 = vpop.f32.mrf.mxu1 }
 0x2ec   : > { %v774_v33 = vsel %vm773_vm4, %v770_v30, -inf }
 0x2ed   : > { %775 = vmax.xlane.f32.xlu0 %v774_v33  ;;  %v759_v34 = vpop.f32.mrf.mxu1 }
 0x2ee   : > { %v771_v36 = vmul.f32 0.25, %v759_v34 }
 0x2ef   : > { %v1742_v37 = vpop.f32.mrf.mxu1 }
 0x2f0   : > { %v1017_v38 = vadd.f32 %v1742_v37, %v1611_v35  ;;  %v777_v40 = vsel %vm773_vm4, %v771_v36, -inf }
 0x2f1   : > { %782 = vmax.xlane.f32.xlu0 %v781_v39  ;;  %v1008_v41 = vpop.f32.mrf.mxu1  ;;  %778 = vmax.xlane.f32.xlu1 %v777_v40 }
 0x2f2   : > { %v1098_v42 = vpack.c.bf16 %v1017_v38, %v1017_v38  ;;  %v1009_v46 = vadd.f32 %v1611_v35, %v1008_v41 }
 0x2f3   : > { %v1743_v43 = vpop.f32.mrf.mxu1 }
 0x2f4   : > { %v1109_v44 = vsel %vm709_vm2, %v1098_v42, 0  ;;  %1782 = vmatprep.subr.msk.bf16.mxu1 %vm709_vm2, %v1098_v42 }
 0x2f5   : > { %v1011_v45 = vpop.f32.mrf.mxu1  ;;  %1753 = vmatpush3.bf16.xpose.msra.mxu1 %v1109_v44 }
 0x2f6   : > { %v1012_v47 = vadd.f32 %v1611_v35, %v1011_v45 }
 0x2f8   : > { %v1097_v48 = vpack.c.bf16 %v1012_v47, %v1009_v46 }
 0x2fa   : > { %1783 = vmatprep.subr.msk.bf16.mxu1 %vm709_vm2, %v1097_v48  ;;  %v1106_v51 = vsel %vm709_vm2, %v1097_v48, 0 }
 0x2fd   : > { %1755 = vmatpush3.bf16.xpose.msra.mxu1 %v1106_v51 }
 0x2fe   : > { %1774 = vmatprep.subr.bf16.mxu1 %v1840_v22 }
 0x376   : > { %v776_v52 = vpop.xlane.xlu0 %775 }
 0x377   : > { %v784_v53 = vsub.f32 %v770_v30, %v776_v52 }
 0x379   : > { %v787_v54 = vmul.f32 1.442695, %v784_v53 }
 0x37a   : > { %v783_v55 = vpop.xlane.xlu0 %782  ;;  %v779_v56 = vpop.xlane.xlu1 %778 }
 0x37b   : > { %1848 = vpow2.f32 %v787_v54  ;;  %v786_v57 = vsub.f32 %v772_v32, %v783_v55  ;;  %v785_v58 = vsub.f32 %v771_v36, %v779_v56 }
 0x37d   : > { %v791_v59 = vmul.f32 1.442695, %v786_v57  ;;  %v789_v60 = vmul.f32 1.442695, %v785_v58 }
 0x37f   : > { %1850 = vpow2.f32 %v791_v59 }
 0x380   : > { %1852 = vpow2.f32 %v789_v60 }
 0x388   : > { %v1849_v61 = vpop.eup %1848 }
 0x389   : > { %v793_v62 = vsel %vm773_vm4, %v1849_v61, 0.0 }
 0x38a   : > { %794 = vadd.xlane.f32.xlu1 %v793_v62 }
 0x38c   : > { %v1851_v63 = vpop.eup %1850 }
 0x38d   : > { %v1853_v3 = vpop.eup %1852  ;;  %v799_v4 = vsel %vm780_vm5, %v1851_v63, 0.0 }
 0x38e   : > { %800 = vadd.xlane.f32.xlu1 %v799_v4  ;;  %v796_v5 = vsel %vm773_vm4, %v1853_v3, 0.0 }
 0x38f   : > { %797 = vadd.xlane.f32.xlu0 %v796_v5 }
 0x413   : > { %v795_v7 = vpop.xlane.xlu1 %794 }
 0x414   : > { %1854 = vrcp.f32 %v795_v7 }
 0x417   : > { %v801_v8 = vpop.xlane.xlu1 %800 }
 0x418   : > { %v798_v9 = vpop.xlane.xlu0 %797  ;;  %1856 = vrcp.f32 %v801_v8 }
 0x419   : > { %1858 = vrcp.f32 %v798_v9 }
 0x421   : > { %v1855_v10 = vpop.eup %1854 }
 0x422   : > { %v805_v15 = vmul.f32 %v1855_v10, %v1849_v61 }
 0x425   : > { %v1857_v11 = vpop.eup %1856 }
 0x426   : > { %v1859_v12 = vpop.eup %1858  ;;  %v807_v13 = vmul.f32 %v1857_v11, %v1851_v63 }
 0x427   : > { %v806_v16 = vmul.f32 %v1859_v12, %v1853_v3 }
 0x428   : > { %v809_v17 = vpack.c.bf16 %v807_v13, %v807_v13 }
 0x429   : > { %v808_v18 = vpack.c.bf16 %v806_v16, %v805_v15 }
 0x42b   : > { %1724 = vmatprep.mubr.msk.bf16.mxu0 %vm773_vm4, %v808_v18 }
 0x42c   : > { %1725 = vmatmul.mubr.msk.bf16.vlgmr.msra.gmra.mxu0 %vm773_vm4, %v809_v17 }
 0x42d   : > { %1729 = vmatpush3.bf16.msra.mxu0 %v1836_v6  ;;  %1732 = vmatprep.mubr.msk.bf16.mxu0 %vm420_vm0, %v2035_v50 }
 0x42e   : > { %1730 = vmatprep.subr.bf16.mxu0 %v1837_v19 }
 0x431   : > { %1731 = vmatpush3.bf16.msra.mxu0 %v1837_v19 }
 0x432   : > { %1744 = vmatprep.subr.bf16.mxu0 %v1838_v20 }
 0x434   : > { %1733 = vmatmul.mubr.msk.bf16.vlgmr.msra.gmra.mxu0 %vm420_vm0, %v2033_v49 }
 0x435   : > { %1745 = vmatpush3.bf16.msra.mxu0 %v1838_v20  ;;  %1748 = vmatprep.mubr.msk.bf16.mxu0 %vm420_vm0, %v2035_v50 }
 0x436   : > { %1746 = vmatprep.subr.bf16.mxu0 %v1839_v21 }
 0x439   : > { %1747 = vmatpush3.bf16.msra.mxu0 %v1839_v21 }
 0x43c   : > { %1749 = vmatmul.mubr.msk.bf16.vlgmr.msra.gmra.mxu0 %vm420_vm0, %v2033_v49  ;;  %v1621_v49 = vld [vmem:[%s2055_s13 + $0x5] ss:$0 sm:$0xff] }
 0x4ec   : > { %v1726_v23 = vpop.f32.mrf.mxu0 }
 0x4ed   : > { %v873_v47 = vpack.c.bf16 %v1726_v23, %v1726_v23 }
 0x4ee   : > { %v858_v24 = vpop.f32.mrf.mxu0 }
 0x4f0   : > { %v1727_v25 = vpop.f32.mrf.mxu0 }
 0x4f2   : > { %v861_v26 = vpop.f32.mrf.mxu0 }
 0x4f3   : > { %v872_v39 = vpack.c.bf16 %v861_v26, %v858_v24 }
 0x4f4   : > { %v1734_v50 = vpop.f32.mrf.mxu0 }
 0x4f5   : > { %v944_v30 = vadd.f32 %v1734_v50, %v1601_v28 }
 0x4f6   : > { %v935_v27 = vpop.f32.mrf.mxu0 }
 0x4f7   : > { %v936_v32 = vadd.f32 %v1601_v28, %v935_v27  ;;  %v1096_v37 = vpack.c.bf16 %v944_v30, %v944_v30  ;;  %v1841_v27 = vld [vmem:[%s2104_s17 + $0x8] sm:$0xff]  }
 0x4f8   : > { %v1735_v29 = vpop.f32.mrf.mxu0 }
 0x4fa   : > { %v938_v31 = vpop.f32.mrf.mxu0 }
 0x4fb   : > { %v939_v33 = vadd.f32 %v1601_v28, %v938_v31 }
 0x4fc   : > { %v1750_v34 = vpop.f32.mrf.mxu0 }
 0x4fd   : > { %v1095_v35 = vpack.c.bf16 %v939_v33, %v936_v32  ;;  %v1090_v36 = vadd.f32 %v1750_v34, %v1621_v49  ;;  %v1638_v34 = vld [vmem:[%s404_s19] ss:$0 sm:$0xff] }
 0x4fe   : > { %v1081_v38 = vpop.f32.mrf.mxu0 }
 0x4ff   : > { %v1198_v40 = vpack.c.bf16 %v1090_v36, %v1090_v36  ;;  %1756 = vmatprep.mubr.msk.bf16.mxu1 %vm709_vm2, %v1095_v35  ;;  %v1082_v44 = vadd.f32 %v1621_v49, %v1081_v38 }
 0x500   : > { %v1751_v41 = vpop.f32.mrf.mxu0  ;;  %1757 = vmatmul.mubr.msk.bf16.vlgmr.msra.gmra.mxu1 %vm709_vm2, %v1096_v37 }
 0x501   : > { %v1206_v42 = vand.u32 %v1198_v40, %v2062_v14  ;;  %1776 = vmatprep.mubr.msk.bf16.mxu1 %vm709_vm2, %v872_v39  ;;  %1775 = vmatpush3.bf16.msra.mxu1 %v1840_v22 }
 0x502   : > { %v1084_v43 = vpop.f32.mrf.mxu0 }
 0x503   : > { %v1085_v45 = vadd.f32 %v1621_v49, %v1084_v43  ;;  %1760 = vmatprep.subr.bf16.mxu0 %v1206_v42 }
 0x504   : > { %1761 = vmatpush3.bf16.msra.mxu0 %v1206_v42 }
 0x505   : > { %v1197_v46 = vpack.c.bf16 %v1085_v45, %v1082_v44 }
 0x507   : > { %1762 = vmatprep.subr.bf16.mxu0 %v1197_v46 }
 0x508   : > { %1763 = vmatpush3.bf16.msra.mxu0 %v1197_v46  ;;  %1777 = vmatmul.mubr.msk.bf16.vlgmr.msra.gmra.mxu1 %vm709_vm2, %v873_v47 }
 0x509   : > { %1768 = vmatprep.subr.bf16.mxu0 %v1841_v27 }
 0x5c0   : > { %v1758_v48 = vpop.f32.mrf.mxu1 }
 0x5c1   : > { %v1161_v54 = vmul.f32 0.25, %v1758_v48 }
 0x5c2   : > { %v1145_v51 = vpop.f32.mrf.mxu1 }
 0x5c3   : > { %v1159_v52 = vmul.f32 0.25, %v1145_v51  ;;  %v1168_v58 = vsel %vm780_vm5, %v1161_v54, -inf }
 0x5c4   : > { %v1759_v53 = vpop.f32.mrf.mxu1 }
 0x5c5   : > { %v1162_v14 = vsel %vm773_vm4, %v1159_v52, -inf }
 0x5c6   : > { %1163 = vmax.xlane.f32.xlu0 %v1162_v14  ;;  %v1148_v55 = vpop.f32.mrf.mxu1 }
 0x5c7   : > { %v1160_v56 = vmul.f32 0.25, %v1148_v55 }
 0x5c8   : > { %v1778_v57 = vpop.f32.mrf.mxu1 }
 0x5c9   : > { %v1165_v59 = vsel %vm773_vm4, %v1160_v56, -inf }
 0x5ca   : > { %1169 = vmax.xlane.f32.xlu0 %v1168_v58  ;;  %1166 = vmax.xlane.f32.xlu1 %v1165_v59  ;;  %v1367_v60 = vpop.f32.mrf.mxu1 }
 0x5cc   : > { %v1779_v61 = vpop.f32.mrf.mxu1 }
 0x5ce   : > { %v1370_v42 = vpop.f32.mrf.mxu1 }
 0x64f   : > { %v1164_v62 = vpop.xlane.xlu0 %1163 }
 0x650   : > { %v1171_v63 = vsub.f32 %v1159_v52, %v1164_v62 }
 0x652   : > { %v1174_v3 = vmul.f32 1.442695, %v1171_v63 }
 0x653   : > { %v1170_v4 = vpop.xlane.xlu0 %1169  ;;  %v1167_v5 = vpop.xlane.xlu1 %1166 }
 0x654   : > { %1860 = vpow2.f32 %v1174_v3  ;;  %v1173_v6 = vsub.f32 %v1161_v54, %v1170_v4  ;;  %v1172_v7 = vsub.f32 %v1160_v56, %v1167_v5 }
 0x656   : > { %v1178_v8 = vmul.f32 1.442695, %v1173_v6  ;;  %v1176_v9 = vmul.f32 1.442695, %v1172_v7 }
 0x658   : > { %1862 = vpow2.f32 %v1178_v8 }
 0x659   : > { %1864 = vpow2.f32 %v1176_v9 }
 0x661   : > { %v1861_v10 = vpop.eup %1860 }
 0x662   : > { %v1180_v11 = vsel %vm773_vm4, %v1861_v10, 0.0 }
 0x663   : > { %1181 = vadd.xlane.f32.xlu1 %v1180_v11 }
 0x665   : > { %v1863_v12 = vpop.eup %1862 }
 0x666   : > { %v1865_v13 = vpop.eup %1864  ;;  %v1186_v15 = vsel %vm780_vm5, %v1863_v12, 0.0 }
 0x667   : > { %1187 = vadd.xlane.f32.xlu1 %v1186_v15  ;;  %v1183_v16 = vsel %vm773_vm4, %v1865_v13, 0.0 }
 0x668   : > { %1184 = vadd.xlane.f32.xlu0 %v1183_v16 }
 0x6ec   : > { %v1182_v17 = vpop.xlane.xlu1 %1181 }
 0x6ed   : > { %1866 = vrcp.f32 %v1182_v17 }
 0x6f0   : > { %v1188_v18 = vpop.xlane.xlu1 %1187 }
 0x6f1   : > { %v1185_v19 = vpop.xlane.xlu0 %1184  ;;  %1868 = vrcp.f32 %v1188_v18 }
 0x6f2   : > { %1870 = vrcp.f32 %v1185_v19 }
 0x6fa   : > { %v1867_v20 = vpop.eup %1866 }
 0x6fb   : > { %v1192_v24 = vmul.f32 %v1867_v20, %v1861_v10 }
 0x6fe   : > { %v1869_v21 = vpop.eup %1868 }
 0x6ff   : > { %v1871_v22 = vpop.eup %1870  ;;  %v1194_v23 = vmul.f32 %v1869_v21, %v1863_v12 }
 0x700   : > { %v1193_v25 = vmul.f32 %v1871_v22, %v1865_v13 }
 0x701   : > { %v1196_v26 = vpack.c.bf16 %v1194_v23, %v1194_v23 }
 0x702   : > { %v1195_v50 = vpack.c.bf16 %v1193_v25, %v1192_v24 }
 0x704   : > { %1764 = vmatprep.mubr.msk.bf16.mxu0 %vm773_vm4, %v1195_v50 }
 0x705   : > { %1765 = vmatmul.mubr.msk.bf16.vlgmr.msra.gmra.mxu0 %vm773_vm4, %v1196_v26 }
 0x706   : > { %1769 = vmatpush3.bf16.msra.mxu0 %v1841_v27 }
 0x7c5   : > { %v1766_v28 = vpop.f32.mrf.mxu0 }
 0x7c6   : > { %v1257_v32 = vpack.c.bf16 %v1766_v28, %v1766_v28 }
 0x7c7   : > { %v1242_v29 = vpop.f32.mrf.mxu0 }
 0x7c9   : > { %v1767_v30 = vpop.f32.mrf.mxu0 }
 0x7cb   : > { %v1245_v31 = vpop.f32.mrf.mxu0 }
 0x7cc   : > { %v1256_v49 = vpack.c.bf16 %v1245_v31, %v1242_v29 }
 0x7ce   : > { %1770 = vmatprep.mubr.msk.bf16.mxu0 %vm709_vm2, %v1256_v49 }
 0x7cf   : > { %1771 = vmatmul.mubr.msk.bf16.vlgmr.msra.gmra.mxu0 %vm709_vm2, %v1257_v32 }
 0x88f   : > { %v1772_v33 = vpop.f32.mrf.mxu0 }
 0x890   : > { %v1376_v35 = vadd.f32 %v1778_v57, %v1772_v33 }
 0x891   : > { %v1307_v36 = vpop.f32.mrf.mxu0 }
 0x892   : > { %v1390_v37 = vadd.f32 %v1638_v34, %v1376_v35  ;;  %v1368_v38 = vadd.f32 %v1367_v60, %v1307_v36 }
 0x893   : > { %v1773_v39 = vpop.f32.mrf.mxu0 }
 0x894   : > { %v1393_v40 = vadd.f32 %v1390_v37, %v2004_v1  ;;  %v1388_v41 = vadd.f32 %v1638_v34, %v1368_v38 }
 0x895   : > { %v1310_v43 = vpop.f32.mrf.mxu0 }
 0x896   : > { %1396 = vst.msk [vmem:[%s413_s22 + $0x10] sm:$0x1] %vm427_vm1, %v1393_v40  ;;  %v1391_v44 = vadd.f32 %v1388_v41, %v2002_v0  ;;  %v1371_v45 = vadd.f32 %v1370_v42, %v1310_v43 }
 0x898   : > { %1394 = vst.msk [vmem:[%s413_s22] sm:$0xff] %vm420_vm0, %v1391_v44  ;;  %v1389_v46 = vadd.f32 %v1638_v34, %v1371_v45 }
 0x89a   : > { %v1392_v47 = vadd.f32 %v1389_v46, %v2006_v2 }
 0x89c   : > { %1395 = vst.msk [vmem:[%s413_s22 + $0x8] sm:$0xff] %vm420_vm0, %v1392_v47 }
 0x89d PF: > { %s17_s28 = sadd.s32 1, %s1910_s28   ;;  %s2163_s24 = smov %s1902_s26 }
 0x89e   : > { %p14_p7 = scmp.ge.s32.totalorder %s17_s28, 8   ;;  %s2164_s25 = smov %s1906_s27 }
 0x89f   : > { %s2165_s26 = smov %s2168_s29  ;;  %s2166_s27 = smov %s2172_s30 }
 0x8a0   :  { %16 = sbr.rel (!%p14_p7) target bundleno = 3 (0x3), region = 107 }

// kernel: early_concat_forward.11
= control target key start
LH: loop header
LB: loop body
LE: loop exit
PB: predicated region body
PF: predicated region fallthrough
CT: control target
= control target key end

     0   :  { %s1060_s0 = inlined_call_operand.vmem [shape: f32[3,2,17,32], index: 0, kind: input, shape index: {}]   ;;  %s1061_s1 = inlined_call_operand.vmem [shape: bf16[3,32,17], index: 1, kind: input, shape index: {}]   ;;  %s1062_s2 = inlined_call_operand.vmem [shape: f32[32,1], index: 2, kind: input, shape index: {}]   ;;  %s1063_s3 = inlined_call_operand.vmem [shape: f32[32,1], index: 3, kind: input, shape index: {}]   ;;  %s1064_s4 = inlined_call_operand.<no memory space> [shape: f32[1,1], index: 4, kind: input, shape index: {}]   ;;  %s1065_s5 = inlined_call_operand.hbm [shape: f32[2,1,32], index: 5, kind: output, shape index: {}]  }
   0x1   :  { %v10_v0 = vstv %s1064_s4 }
   0x2   :  { %11 = vst [vmem:[#allocation2] sm:$0x1] %v10_v0 }
   0x3   :  { %12 = vsyncpa [#allocation5], 0 }
   0x4   :  { %14 = vsyncpa [#allocation5 + $0x1], 0  ;;  %s915_s20 = smov 0   ;;  %s917_s21 = smov 0  }
   0x5   :  { %s919_s22 = smov 0   ;;  %s921_s23 = smov 0  }
   0x6 LB: > { %s696_s4 = sadd.s32 4294967295, %s878_s23   ;;  %s697_s24 = sadd.s32 4294967294, %s878_s23   ;;  %s878_s23 = sphi %s921_s23, %s1073_s23   ;;  %s874_s22 = sphi %s919_s22, %s1072_s22   ;;  %s870_s21 = sphi %s917_s21, %s1071_s21   ;;  %s866_s20 = sphi %s915_s20, %s1070_s20  }
   0x7   : > { %s938_s25 = sadd.s32 1, %s878_s23   ;;  %s27_s26 = sadd.s32 1, %s874_s22 }
   0x8   : > { %s24_s27 = ssub.s32 %s878_s23, %s938_s25  ;;  %p34_p0 = scmp.ne.s32.totalorder %s874_s22, %s870_s21 }
   0x9   : > { %p25_p1 = scmp.eq.s32.totalorder %s24_s27, 0  ;;  %p35_p2 = scmp.eq.s32.totalorder %s878_s23, 0 }
   0xa   : > { %p148_p3 = scmp.eq.s32.totalorder %s696_s4, 1  ;;  %p153_p4 = scmp.ne.s32.totalorder %s870_s21, %s866_s20 }
   0xb   : > { %s951_s28 = scalar_select %p25_p1, %s874_s22, %s27_s26  }
   0xc   : > { %p36_p5 = por %p35_p2, %p34_p0  ;;  %p953_p6 = por %p148_p3, %p34_p0 }
   0xd   : > { %p154_p7 = scmp.eq.s32.totalorder %s697_s24, 1  ;;  %p1066_p9 = scmp.ge.s32.totalorder %s878_s23, 2 }
   0xf   : > { %p957_p8 = por %p154_p7, %p153_p4  ;;  %182 = sbr.rel (%p1066_p9) target bundleno = 30 (0x1e), region = 32 }
  0x14   : > { %185 = sbr.rel (!%p36_p5) target bundleno = 30 (0x1e), region = 36  ;;  %s187_s6 = sand.u32 (%p36_p5), 1, %s874_s22  }
  0x15   : > { %s768_s7 = smul.u32 (%p36_p5), 24, %s878_s23 }
  0x16   : > { %s767_s8 = smul.u32 (%p36_p5), 72, %s187_s6 }
  0x17   : > { %s192_s11 = scalar_lea.vmem (%p36_p5), %s1060_s0, %s768_s7 }
  0x18   : > { %v237_v1 = vld [vmem:[%s192_s11] sm:$0xff] (%p36_p5)  ;;  %v239_v2 = vld [vmem:[%s192_s11 + $0x8] sm:$0xff] (%p36_p5)  ;;  %v241_v3 = vld [vmem:[%s192_s11 + $0x10] sm:$0xff] (%p36_p5)  ;;  %s189_s12 = scalar_lea.vmem (%p36_p5), [#allocation3], %s767_s8 }
  0x19   : > { %238 = vst [vmem:[%s189_s12] sm:$0xff] %v237_v1  ;;  %240 = vst [vmem:[%s189_s12 + $0x8] sm:$0xff] %v239_v2  ;;  %v243_v4 = vld [vmem:[%s192_s11 + $0x30] sm:$0xff]  ;;  %v245_v5 = vld [vmem:[%s192_s11 + $0x38] sm:$0xff] }
  0x1a   : > { %242 = vst [vmem:[%s189_s12 + $0x10] sm:$0xff] %v241_v3  ;;  %v247_v6 = vld [vmem:[%s192_s11 + $0x40] sm:$0xff]  ;;  %244 = vst [vmem:[%s189_s12 + $0x18] sm:$0xff] %v243_v4  ;;  %v251_v8 = vld [vmem:[%s192_s11 + $0x68] sm:$0xff] }
  0x1b   : > { %246 = vst [vmem:[%s189_s12 + $0x20] sm:$0xff] %v245_v5  ;;  %248 = vst [vmem:[%s189_s12 + $0x28] sm:$0xff] %v247_v6  ;;  %v249_v7 = vld [vmem:[%s192_s11 + $0x60] sm:$0xff]  ;;  %v253_v9 = vld [vmem:[%s192_s11 + $0x70] sm:$0xff] }
  0x1c   : > { %250 = vst [vmem:[%s189_s12 + $0x30] sm:$0xff] %v249_v7  ;;  %252 = vst [vmem:[%s189_s12 + $0x38] sm:$0xff] %v251_v8 }
  0x1d   : > { %254 = vst [vmem:[%s189_s12 + $0x40] sm:$0xff] %v253_v9 }
  0x1e PF: > { %p701_p10 = scmp.ge.s32.totalorder %s878_s23, 1  ;;  %p259_p11 = scmp.lt.s32.totalorder %s878_s23, 3 }
  0x20   : > { %p260_p12 = pnand %p701_p10, %p259_p11 }
  0x21   : > { %s972_s13 = sand.u32 (!%p260_p12), 1, %s870_s21   ;;  %s728_s11 = sshll.u32 (!%p260_p12), %s696_s4, 4 }
  0x22   : > { %263 = sbr.rel (%p260_p12) target bundleno = 302 (0x12e), region = 74  ;;  %s291_s12 = scalar_lea.vmem (!%p260_p12), [#allocation4], %s972_s13 }
  0x23   : > { %s769_s16 = smul.u32 (!%p260_p12), 72, %s972_s13  ;;  %s636_s14 = sshll.u32 (!%p260_p12), %s291_s12, 4  ;;  %s637_s14 = int_to_ptr.vmem [resolvable:$true] %s636_s14 }
  0x24   : > { %s634_s17 = scalar_lea.hbm (!%p260_p12), %s1065_s5, %s728_s11  ;;  %s624_s18 = scalar_lea.sflag (!%p260_p12), [#allocation5], %s972_s13 }
  0x25   : > { %s268_s19 = scalar_lea.vmem (!%p260_p12), [#allocation3], %s769_s16  ;;  %s881_s24 = smov (!%p260_p12), [#allocation4]  }
  0x26   : > { %s822_s4 = sshll.u32 (!%p260_p12), %s881_s24, 4  ;;  %s823_s4 = int_to_ptr.vmem [resolvable:$false] %s822_s4 }
  0x27   : > { %v812_v10 = vld [vmem:[%s1061_s1 + $0x10] sm:$0xff]   ;;  %vm330_vm0 = vcmask 1040384   ;;  %vm323_vm1 = vcmask 138240   ;;  %v813_v11 = vld [vmem:[%s1061_s1] sm:$0xff]   ;;  %v880_v12 = vmov 0   ;;  %v814_v31 = vld [vmem:[%s1061_s1 + $0x18] sm:$0xff]   ;;  %p825_p2 = scmp.lt.s32.totalorder %s637_s14, %s823_s4 }
  0x28   : > { %810 = vset.pattern.permute.xlu0 %v880_v12  ;;  %811 = vset.pattern.permute.xlu1 %v880_v12  ;;  %v704_v13 = vld [vmem:[%s268_s19 + $0x28] sm:$0x1]  ;;  %v332_v14 = vsel %vm330_vm0, 65535, %v880_v12  ;;  %v295_v15 = vld [vmem:[%s268_s19 + $0x10] sm:$0x1]  ;;  %v702_v16 = vld [vmem:[%s268_s19 + $0x18] sm:$0xff] }
  0x29   : > { %747 = vmatprep.mubr.msk.bf16.mxu0 %vm323_vm1, %v812_v10  ;;  %755 = vmatprep.mubr.msk.bf16.mxu1 %vm323_vm1, %v813_v11  ;;  %v307_v17 = vpack.c.bf16 %v704_v13, %v704_v13  ;;  %v297_v18 = vpack.c.bf16 %v295_v15, %v295_v15  ;;  %v703_v19 = vld [vmem:[%s268_s19 + $0x20] sm:$0xff]  ;;  %v294_v21 = vld [vmem:[%s268_s19 + $0x8] sm:$0xff]  ;;  %v717_v32 = vld [vmem:[%s268_s19 + $0x30] sm:$0xff]  ;;  %vm596_vm2 = vcmask 261120   ;;  %vm621_vm3 = vcmask 253952   ;;  %s824_s26 = scalar_lea.vmem %s823_s4, 32 }
  0x2a   : > { %v293_v20 = vld [vmem:[%s268_s19] sm:$0xff]  ;;  %v306_v22 = vpack.c.bf16 %v703_v19, %v702_v16  ;;  %v718_v33 = vld [vmem:[%s268_s19 + $0x38] sm:$0xff] }
  0x2b   : > { %v719_v23 = vld [vmem:[%s268_s19 + $0x40] sm:$0x1]  ;;  %v334_v24 = vand.u32 %v332_v14, %v307_v17  ;;  %v402_v25 = vand.u32 %v332_v14, %v297_v18  ;;  %v296_v26 = vpack.c.bf16 %v294_v21, %v293_v20  ;;  %v538_v29 = vld [vmem:[%s1062_s2 + $0x10] sm:$0xff]  ;;  %v539_v36 = vld [vmem:[%s1062_s2 + $0x18] sm:$0xff]  ;;  %v457_v38 = vpack.c.bf16 %v718_v33, %v717_v32  ;;  %s818_s19 = scalar_lea.vmem %s637_s14, 16 }
  0x2c   : > { %v458_v27 = vpack.c.bf16 %v719_v23, %v719_v23  ;;  %v536_v28 = vld [vmem:[%s1062_s2] sm:$0xff]  ;;  %552 = vperm.xlu1 %811, %v538_v29   ;;  %v815_v34 = vld [vmem:[%s1061_s1 + $0x8] sm:$0xff]   ;;  %v570_v42 = vld [vmem:[%s1063_s3 + $0x10] sm:$0xff]  ;;  %p819_p13 = scmp.ne.s32.totalorder %s637_s14, %s818_s19  ;;  %p826_p3 = scmp.lt.s32.totalorder %s824_s26, %s818_s19 }
  0x2d   : > { %743 = vmatprep.subr.bf16.mxu0 %v334_v24  ;;  %751 = vmatprep.subr.bf16.mxu1 %v402_v25  ;;  %v537_v35 = vld [vmem:[%s1062_s2 + $0x8] sm:$0xff]  ;;  %v816_v37 = vld [vmem:[%s1061_s1 + $0x20] sm:$0xff]   ;;  %v571_v43 = vld [vmem:[%s1063_s3 + $0x18] sm:$0xff] }
  0x2e   : > { %744 = vmatpush3.bf16.msra.mxu0 %v334_v24  ;;  %752 = vmatpush3.bf16.msra.mxu1 %v402_v25  ;;  %v481_v30 = vand.u32 %v458_v27, %v332_v14  ;;  %v568_v39 = vld [vmem:[%s1063_s3] sm:$0xff]  ;;  %v569_v40 = vld [vmem:[%s1063_s3 + $0x8] sm:$0xff]  ;;  %v616_v27 = vlaneseq  ;;  %p820_p0 = pnand %p819_p13, %p953_p6  ;;  %p827_p4 = por %p826_p3, %p825_p2 }
  0x2f   : > { %745 = vmatprep.subr.bf16.mxu0 %v306_v22  ;;  %753 = vmatprep.subr.bf16.mxu1 %v296_v26  ;;  %v817_v41 = vld [vmem:[%s1061_s1 + $0x28] sm:$0xff]   ;;  %v610_v44 = vld [vmem:[#allocation2] sm:$0x1] }
  0x30   : > { %542 = vperm.xlu0 %810, %v536_v28   ;;  %557 = vperm.xlu1 %811, %v539_v36   ;;  %p821_p1 = pneg %p820_p0 }
  0x32   : > { %746 = vmatpush3.bf16.msra.mxu0 %v306_v22  ;;  %754 = vmatpush3.bf16.msra.mxu1 %v296_v26  ;;  %p828_p5 = pnand %p827_p4, %p821_p1 }
  0x33   : > { %759 = vmatprep.subr.bf16.mxu0 %v481_v30 }
  0x34   : > { %547 = vperm.xlu0 %810, %v537_v35   ;;  %579 = vperm.xlu1 %811, %v569_v40  }
  0x35   : > { %748 = vmatmul.mubr.msk.bf16.vlgmr.msra.gmra.mxu0 %vm323_vm1, %v814_v31  ;;  %756 = vmatmul.mubr.msk.bf16.vlgmr.msra.gmra.mxu1 %vm323_vm1, %v815_v34 }
  0x36   : > { %760 = vmatpush3.bf16.msra.mxu0 %v481_v30  ;;  %763 = vmatprep.mubr.msk.bf16.mxu0 %vm323_vm1, %v816_v37  ;;  %v617_v30 = vshrl.u32 %v616_v27, 7 }
  0x37   : > { %761 = vmatprep.subr.bf16.mxu0 %v457_v38 }
  0x38   : > { %574 = vperm.xlu0 %810, %v568_v39   ;;  %589 = vperm.xlu1 %811, %v571_v43   ;;  %v618_v33 = vsub.s32 0, %v617_v30 }
  0x3a   : > { %762 = vmatpush3.bf16.msra.mxu0 %v457_v38 }
  0x3c   : > { %584 = vperm.xlu0 %810, %v570_v42  }
  0x3d   : > { %764 = vmatmul.mubr.msk.bf16.vlgmr.msra.gmra.mxu0 %vm323_vm1, %v817_v41 }
  0x40   : > { %613 = vperm.xlu0 %810, %v610_v44  }
  0xa7   : > { %v553_v50 = vpop.permute.xlu1 %552 }
  0xab   : > { %v543_v47 = vpop.permute.xlu0 %542  ;;  %v558_v58 = vpop.permute.xlu1 %557 }
  0xaf   : > { %v548_v55 = vpop.permute.xlu0 %547  ;;  %v580_v10 = vpop.permute.xlu1 %579 }
  0xb3   : > { %v575_v5 = vpop.permute.xlu0 %574  ;;  %v590_v19 = vpop.permute.xlu1 %589 }
  0xb7   : > { %v585_v16 = vpop.permute.xlu0 %584 }
  0xbb   : > { %v614_v35 = vpop.permute.xlu0 %613 }
  0xbc   : > { %v619_v37 = vrot.slane %v614_v35, %v618_v33 }
  0xf5   : > { %v749_v45 = vpop.f32.mrf.mxu0  ;;  %v757_v46 = vpop.f32.mrf.mxu1 }
  0xf6   : > { %v447_v54 = vadd.f32 %v757_v46, %v749_v45 }
  0xf7   : > { %v370_v48 = vpop.f32.mrf.mxu0  ;;  %v438_v49 = vpop.f32.mrf.mxu1 }
  0xf8   : > { %v439_v57 = vadd.f32 %v438_v49, %v370_v48 }
  0xf9   : > { %v750_v51 = vpop.f32.mrf.mxu0  ;;  %v758_v52 = vpop.f32.mrf.mxu1 }
  0xfa   : > { %v450_v62 = vadd.f32 %v758_v52, %v750_v51 }
  0xfb   : > { %v373_v53 = vpop.f32.mrf.mxu0  ;;  %v441_v60 = vpop.f32.mrf.mxu1 }
  0xfc   : > { %v442_v1 = vadd.f32 %v441_v60, %v373_v53 }
  0xfd   : > { %v765_v56 = vpop.f32.mrf.mxu0 }
  0xfe   : > { %v534_v59 = vadd.f32 %v765_v56, %v447_v54 }
  0xff   : > { %v517_v61 = vpop.f32.mrf.mxu0 }
 0x100   : > { %v532_v63 = vadd.f32 %v517_v61, %v439_v57  ;;  %v562_v2 = vadd.f32 %v553_v50, %v534_v59 }
 0x101   : > { %v766_v0 = vpop.f32.mrf.mxu0 }
 0x102   : > { %v560_v3 = vadd.f32 %v543_v47, %v532_v63  ;;  %v535_v4 = vadd.f32 %v766_v0, %v450_v62  ;;  %v566_v11 = vmax.f32 %v562_v2, 0.0 }
 0x103   : > { %v520_v6 = vpop.f32.mrf.mxu0 }
 0x104   : > { %v564_v7 = vmax.f32 %v560_v3, 0.0  ;;  %v563_v8 = vadd.f32 %v558_v58, %v535_v4  ;;  %v533_v9 = vadd.f32 %v520_v6, %v442_v1  ;;  %v594_v17 = vmul.f32 %v585_v16, %v566_v11 }
 0x106   : > { %v561_v12 = vadd.f32 %v548_v55, %v533_v9  ;;  %v592_v13 = vmul.f32 %v575_v5, %v564_v7  ;;  %v567_v14 = vmax.f32 %v563_v8, 0.0  ;;  %v600_v24 = vsel %vm596_vm2, %v594_v17, 0.0 }
 0x108   : > { %v565_v15 = vmax.f32 %v561_v12, 0.0  ;;  %v595_v20 = vmul.f32 %v590_v19, %v567_v14  ;;  %v597_v21 = vsel %vm596_vm2, %v592_v13, 0.0 }
 0x10a   : > { %v593_v18 = vmul.f32 %v580_v10, %v565_v15  ;;  %v602_v26 = vsel %vm596_vm2, %v595_v20, 0.0 }
 0x10c   : > { %v598_v22 = vsel %vm596_vm2, %v593_v18, 0.0 }
 0x10d   : > { %v599_v23 = vadd.f32 %v598_v22, %v597_v21 }
 0x10f   : > { %v601_v25 = vadd.f32 %v600_v24, %v599_v23 }
 0x111   : > { %v603_v28 = vadd.f32 %v602_v26, %v601_v25 }
 0x113   : > { %v604_v29 = vrot.slane %v603_v28, 4 }
 0x115   : > { %v605_v31 = vadd.f32 %v604_v29, %v603_v28 }
 0x117   : > { %v606_v32 = vrot.slane %v605_v31, 2 }
 0x119   : > { %v607_v34 = vadd.f32 %v606_v32, %v605_v31 }
 0x11b   : > { %v608_v36 = vrot.slane %v607_v34, 1 }
 0x11d   : > { %v609_v38 = vadd.f32 %v608_v36, %v607_v34 }
 0x11f   : > { %v620_v39 = vadd.f32 %v619_v37, %v609_v38 }
 0x121   : > { %622 = vst.msk [vmem:[%s291_s12] sm:$0x1] %vm621_vm3, %v620_v39 }
 0x122   : > { %831 = shalt.err (!%p828_p5)
}
 0x123   : > { %s832_s27 = scalar_lea.hbm %s634_s17, 16  ;;  %s836_s7 = scalar_lea.hbm %s1065_s5, 32 }
 0x124   : > { %p833_p7 = scmp.ne.s32.totalorder %s634_s17, %s832_s27  ;;  %p837_p12 = scmp.lt.s32.totalorder %s634_s17, %s1065_s5 }
 0x125   : > { %p838_p13 = scmp.lt.s32.totalorder %s836_s7, %s832_s27 }
 0x126   : > { %p834_p10 = pnand %p833_p7, %p953_p6 }
 0x127   : > { %p839_p0 = por %p838_p13, %p837_p12 }
 0x128   : > { %p835_p11 = pneg %p834_p10 }
 0x12a   : > { %p840_p9 = pnand %p839_p0, %p835_p11 }
 0x12c   : > { %843 = shalt.err (!%p840_p9)
}
 0x12d   : > { %770 = dma.vmem_to_hbm [thread:$0]  (%p953_p6), %s637_s14, 16, %s634_s17, %s624_s18  }
 0x12e PF: > { %s648_s10 = sand.u32 1, %s866_s20   ;;  %p1069_p1 = scmp.ge.s32.totalorder %s878_s23, 2 }
 0x12f   : > { %s649_s11 = scalar_lea.sflag [#allocation5], %s648_s10 }
 0x130   : > { %p773_p2 = pnand %p1069_p1, %p957_p8 }
 0x132   : > { %p774_p3 = pneg %p773_p2 }
 0x134   : > { %861 = dma.done.wait (%p774_p3), %s649_s11, 16  }
 0x135   : > { %863 = vsyncadd (%p774_p3), %s649_s11, 4294967280  ;;  %p17_p9 = scmp.ge.s32.totalorder %s938_s25, 4   ;;  %s1070_s20 = smov %s870_s21 }
 0x136   : > { %s1071_s21 = smov %s874_s22  ;;  %s1072_s22 = smov %s951_s28 }
 0x137   : > { %s1073_s23 = smov %s938_s25  ;;  %19 = sbr.rel (!%p17_p9) target bundleno = 6 (0x6), region = 122 }
 0x13c   :  { %653 = vsyncpa [#allocation5], 1 }
 0x13d   :  { %655 = vsyncpa [#allocation5 + $0x1], 1 }

</bundles_post_ra>
